<compile_context>
chip_gen: v6e
topology: v6e:2x2x1
jax: 0.10.0
libtpu: 0.0.40
codegen_flags: <defaults>
</compile_context>

<pallas_src>
import math

import jax
import jax.numpy as jnp
from jax.experimental import pallas as pl
from jax.experimental.pallas import tpu as pltpu

# Keep XLA's reference matmuls at true f32 so the Pallas MXU results match.
jax.config.update("jax_default_matmul_precision", "highest")


# ----------------------------------------------------------------------------
# Shared math helpers (identical in kernels and reference).
# ----------------------------------------------------------------------------
def _gelu_tanh(x):
    c = 0.7978845608028654  # sqrt(2 / pi)
    return 0.5 * x * (1.0 + jnp.tanh(c * (x + 0.044715 * x * x * x)))


# ----------------------------------------------------------------------------
# Kernel 1: scalar-prefetch row gather (embedding lookup / torch.gather).
# ----------------------------------------------------------------------------
def _gather_copy_kernel(idx_ref, src_ref, o_ref):
    del idx_ref  # consumed by the index_map only
    o_ref[...] = src_ref[...]


def gather_rows(table, idx):
    """out[i, :] = table[idx[i], :]  (data-dependent DMA via scalar prefetch)."""
    r, h = table.shape
    (m,) = idx.shape
    table3 = table.reshape(r, 1, h)  # keep last-two block dims == full dims
    out = pl.pallas_call(
        _gather_copy_kernel,
        grid_spec=pltpu.PrefetchScalarGridSpec(
            num_scalar_prefetch=1,
            grid=(m,),
            in_specs=[
                pl.BlockSpec((1, 1, h), lambda i, idx_ref: (idx_ref[i], 0, 0)),
            ],
            out_specs=pl.BlockSpec((1, 1, h), lambda i, idx_ref: (i, 0, 0)),
        ),
        out_shape=jax.ShapeDtypeStruct((m, 1, h), table.dtype),
        compiler_params=pltpu.CompilerParams(
            dimension_semantics=("parallel",)),
    )(idx.astype(jnp.int32), table3)
    return out.reshape(m, h)


# ----------------------------------------------------------------------------
# Kernel 2: tiled matmul + bias (+ optional GELU).
# ----------------------------------------------------------------------------
def _linear_kernel(activation):
    def kernel(x_ref, w_ref, b_ref, o_ref, acc_ref):
        k = pl.program_id(2)

        @pl.when(k == 0)
        def _():
            acc_ref[...] = jnp.zeros_like(acc_ref)

        acc_ref[...] += jnp.dot(
            x_ref[...].astype(jnp.float32),
            w_ref[...].astype(jnp.float32),
            preferred_element_type=jnp.float32,
        )

        @pl.when(k == pl.num_programs(2) - 1)
        def _():
            y = acc_ref[...] + b_ref[...].astype(jnp.float32)
            if activation == "gelu":
                y = _gelu_tanh(y)
            o_ref[...] = y.astype(o_ref.dtype)

    return kernel


def linear(x, w, b, activation=None):
    m, k = x.shape
    k2, n = w.shape
    assert k == k2 and b.shape == (1, n)
    # Largest tile that fits comfortably; full dim at demo scale.
    tm = m if m <= 256 else 256
    tn = n if n <= 256 else 256
    tk = k if k <= 512 else 512
    assert m % tm == 0 and n % tn == 0 and k % tk == 0
    return pl.pallas_call(
        _linear_kernel(activation),
        out_shape=jax.ShapeDtypeStruct((m, n), x.dtype),
        grid=(m // tm, n // tn, k // tk),
        in_specs=[
            pl.BlockSpec((tm, tk), lambda i, j, kk: (i, kk)),
            pl.BlockSpec((tk, tn), lambda i, j, kk: (kk, j)),
            pl.BlockSpec((1, tn), lambda i, j, kk: (0, j)),
        ],
        out_specs=pl.BlockSpec((tm, tn), lambda i, j, kk: (i, j)),
        scratch_shapes=[pltpu.VMEM((tm, tn), jnp.float32)],
        compiler_params=pltpu.CompilerParams(
            dimension_semantics=("parallel", "parallel", "arbitrary")),
    )(x, w, b)


# ----------------------------------------------------------------------------
# Kernel 3: fused residual add + LayerNorm.
# ----------------------------------------------------------------------------
def _add_ln_kernel(eps):
    def kernel(x_ref, res_ref, g_ref, b_ref, o_ref):
        x = x_ref[...].astype(jnp.float32) + res_ref[...].astype(jnp.float32)
        mu = jnp.mean(x, axis=-1, keepdims=True)
        var = jnp.mean((x - mu) * (x - mu), axis=-1, keepdims=True)
        y = (x - mu) * jax.lax.rsqrt(var + eps)
        o_ref[...] = (y * g_ref[...].astype(jnp.float32)
                      + b_ref[...].astype(jnp.float32)).astype(o_ref.dtype)

    return kernel


def add_layernorm(x, res, gamma, beta, eps=1e-12):
    m, h = x.shape
    tm = m if m <= 512 else 512
    assert m % tm == 0
    return pl.pallas_call(
        _add_ln_kernel(eps),
        out_shape=jax.ShapeDtypeStruct((m, h), x.dtype),
        grid=(m // tm,),
        in_specs=[
            pl.BlockSpec((tm, h), lambda i: (i, 0)),
            pl.BlockSpec((tm, h), lambda i: (i, 0)),
            pl.BlockSpec((1, h), lambda i: (0, 0)),
            pl.BlockSpec((1, h), lambda i: (0, 0)),
        ],
        out_specs=pl.BlockSpec((tm, h), lambda i: (i, 0)),
        compiler_params=pltpu.CompilerParams(
            dimension_semantics=("parallel",)),
    )(x, res, gamma, beta)


# ----------------------------------------------------------------------------
# Kernel 4: per-(batch, head) fused self-attention.
# ----------------------------------------------------------------------------
def _attn_kernel(scale):
    def kernel(q_ref, k_ref, v_ref, mbias_ref, o_ref):
        q = q_ref[0, 0].astype(jnp.float32)   # (S, Dh)
        k = k_ref[0, 0].astype(jnp.float32)   # (S, Dh)
        v = v_ref[0, 0].astype(jnp.float32)   # (S, Dh)
        s = jax.lax.dot_general(
            q, k, (((1,), (1,)), ((), ())),
            preferred_element_type=jnp.float32) * scale        # (S, S)
        s = s + mbias_ref[0]                                   # (1, S) bcast
        m = jnp.max(s, axis=-1, keepdims=True)
        e = jnp.exp(s - m)
        p = e * pl.reciprocal(jnp.sum(e, axis=-1, keepdims=True), approx=True)
        o_ref[0, 0] = jnp.dot(
            p, v, preferred_element_type=jnp.float32).astype(o_ref.dtype)

    return kernel


def attention(q, k, v, mbias, scale):
    b, nh, s, dh = q.shape
    spec_qkv = pl.BlockSpec((1, 1, s, dh), lambda bi, hi: (bi, hi, 0, 0))
    return pl.pallas_call(
        _attn_kernel(scale),
        out_shape=jax.ShapeDtypeStruct((b, nh, s, dh), q.dtype),
        grid=(b, nh),
        in_specs=[
            spec_qkv, spec_qkv, spec_qkv,
            pl.BlockSpec((1, 1, s), lambda bi, hi: (bi, 0, 0)),
        ],
        out_specs=pl.BlockSpec((1, 1, s, dh), lambda bi, hi: (bi, hi, 0, 0)),
        compiler_params=pltpu.CompilerParams(
            dimension_semantics=("parallel", "parallel")),
    )(q, k, v, mbias)


# ----------------------------------------------------------------------------
# Parameters and the full forward pass (Pallas) + pure-JAX reference.
# ----------------------------------------------------------------------------
def init_params(key, cfg):
    h, inter, v, nl, s = (cfg["hidden"], cfg["intermediate"], cfg["vocab"],
                          cfg["layers"], cfg["max_seq"])

    def nrm(k, shape):
        return 0.02 * jax.random.normal(k, shape, dtype=jnp.float32)

    keys = jax.random.split(key, 4 + nl)
    params = {
        "word_emb": nrm(keys[0], (v, h)),
        "pos_emb": nrm(keys[1], (s, h)),
        "type_emb": nrm(keys[2], (2, h)),
        "emb_ln_g": jnp.ones((1, h), jnp.float32),
        "emb_ln_b": jnp.zeros((1, h), jnp.float32),
        "layers": [],
    }
    for li in range(nl):
        lk = jax.random.split(keys[4 + li], 8)
        params["layers"].append({
            "wqkv": nrm(lk[0], (h, 3 * h)), "bqkv": nrm(lk[1], (1, 3 * h)),
            "wo": nrm(lk[2], (h, h)), "bo": nrm(lk[3], (1, h)),
            "ln1_g": jnp.ones((1, h), jnp.float32),
            "ln1_b": jnp.zeros((1, h), jnp.float32),
            "w1": nrm(lk[4], (h, inter)), "b1": nrm(lk[5], (1, inter)),
            "w2": nrm(lk[6], (inter, h)), "b2": nrm(lk[7], (1, h)),
            "ln2_g": jnp.ones((1, h), jnp.float32),
            "ln2_b": jnp.zeros((1, h), jnp.float32),
        })
    return params


def bert_pallas_forward(params, var_h, attn_mask, starts, cfg):
    b, s = var_h.shape
    h, nh = cfg["hidden"], cfg["heads"]
    dh = h // nh
    m = b * s

    # Embeddings: word-id gather (Pallas) + position/type add + LayerNorm.
    wemb = gather_rows(params["word_emb"], var_h.reshape(-1))          # (M, H)
    pos_type = params["pos_emb"][:s] + params["type_emb"][0]           # (S, H)
    pos_type = jnp.broadcast_to(pos_type[None], (b, s, h)).reshape(m, h)
    x = add_layernorm(wemb, pos_type, params["emb_ln_g"], params["emb_ln_b"])

    # Additive attention-mask bias (B, 1, S).
    mbias = ((1.0 - attn_mask.astype(jnp.float32)) * -1e9)[:, None, :]
    scale = 1.0 / math.sqrt(dh)

    for layer in params["layers"]:
        qkv = linear(x, layer["wqkv"], layer["bqkv"])                  # (M, 3H)
        qkv = qkv.reshape(b, s, 3, nh, dh).transpose(2, 0, 3, 1, 4)    # layout plumbing
        q, k, v = qkv[0], qkv[1], qkv[2]                               # (B,nH,S,Dh)
        ctx = attention(q, k, v, mbias, scale)                         # (B,nH,S,Dh)
        ctx = ctx.transpose(0, 2, 1, 3).reshape(m, h)
        attn_out = linear(ctx, layer["wo"], layer["bo"])
        x = add_layernorm(attn_out, x, layer["ln1_g"], layer["ln1_b"])
        h1 = linear(x, layer["w1"], layer["b1"], activation="gelu")
        h2 = linear(h1, layer["w2"], layer["b2"])
        x = add_layernorm(h2, x, layer["ln2_g"], layer["ln2_b"])

    # torch.gather(all_hidden, dim=-2, index=starts.expand(B, U, H)).
    u = starts.shape[1]
    flat_idx = (jnp.arange(b, dtype=jnp.int32)[:, None] * s
                + starts.astype(jnp.int32)).reshape(-1)                # (B*U,)
    gathered = gather_rows(x, flat_idx)                                # (B*U, H)
    return gathered.reshape(b, u, h)


def _ln_ref(x, g, bta, eps=1e-12):
    mu = jnp.mean(x, axis=-1, keepdims=True)
    var = jnp.mean((x - mu) * (x - mu), axis=-1, keepdims=True)
    return (x - mu) * jax.lax.rsqrt(var + eps) * g + bta


def bert_ref_forward(params, var_h, attn_mask, starts, cfg):
    b, s = var_h.shape
    h, nh = cfg["hidden"], cfg["heads"]
    dh = h // nh
    m = b * s

    x = jnp.take(params["word_emb"], var_h.reshape(-1), axis=0)
    pos_type = params["pos_emb"][:s] + params["type_emb"][0]
    x = _ln_ref(x + jnp.broadcast_to(pos_type[None], (b, s, h)).reshape(m, h),
                params["emb_ln_g"], params["emb_ln_b"])

    mbias = ((1.0 - attn_mask.astype(jnp.float32)) * -1e9)[:, None, None, :]
    for layer in params["layers"]:
        qkv = x @ layer["wqkv"] + layer["bqkv"]
        qkv = qkv.reshape(b, s, 3, nh, dh).transpose(2, 0, 3, 1, 4)
        q, k, v = qkv[0], qkv[1], qkv[2]
        sc = jnp.einsum("bhqd,bhkd->bhqk", q, k) / math.sqrt(dh) + mbias
        p = jax.nn.softmax(sc, axis=-1)
        ctx = jnp.einsum("bhqk,bhkd->bhqd", p, v)
        ctx = ctx.transpose(0, 2, 1, 3).reshape(m, h)
        attn_out = ctx @ layer["wo"] + layer["bo"]
        x = _ln_ref(attn_out + x, layer["ln1_g"], layer["ln1_b"])
        h1 = _gelu_tanh(x @ layer["w1"] + layer["b1"])
        h2 = h1 @ layer["w2"] + layer["b2"]
        x = _ln_ref(h2 + x, layer["ln2_g"], layer["ln2_b"])

    all_hidden = x.reshape(b, s, h)
    u = starts.shape[1]
    pos = jnp.broadcast_to(starts[..., None], (b, u, h))
    return jnp.take_along_axis(all_hidden, pos, axis=1)


if __name__ == "__main__":
    cfg = dict(vocab=64, hidden=32, heads=2, layers=2,
               intermediate=128, max_seq=8)
    B, S, U = 2, 8, 4

    key = jax.random.PRNGKey(0)
    kp, kid, kst = jax.random.split(key, 3)
    params = init_params(kp, cfg)

    var_h = jax.random.randint(kid, (B, S), 0, cfg["vocab"], dtype=jnp.int32)
    attn_mask = jnp.array([[1, 1, 1, 1, 1, 1, 1, 1],
                           [1, 1, 1, 1, 1, 1, 0, 0]], dtype=jnp.float32)
    starts = jax.random.randint(kst, (B, U), 0, S, dtype=jnp.int32)

    fwd = jax.jit(lambda p, i, mk, st: bert_pallas_forward(p, i, mk, st, cfg))
    out = fwd(params, var_h, attn_mask, starts)
    out = jax.block_until_ready(out)

    ref = bert_ref_forward(params, var_h, attn_mask, starts, cfg)
    assert out.shape == (B, U, cfg["hidden"])
    assert jnp.allclose(out, ref, atol=1e-3, rtol=1e-3), float(
        jnp.max(jnp.abs(out - ref)))

    print("KERNEL_OK")
</pallas_src>

<mosaic_0001>
module attributes {stable_mosaic.version = 11 : i64} {
  func.func @_gather_copy_kernel(%arg0: i32, %arg1: memref<16xi32, #tpu.memory_space<smem>>, %arg2: memref<1x1x32xf32, #tpu.memory_space<vmem>>, %arg3: memref<1x1x32xf32, #tpu.memory_space<vmem>>) attributes {dimension_semantics = [#tpu.dimension_semantics<parallel>], iteration_bounds = array<i64: 16>, scalar_prefetch = 1 : i64, scratch_operands = 0 : i64, tpu.core_type = #tpu.core_type<tc>, window_params = [{transform_indices = @transform_0, window_bounds = array<i64: 1, 1, 32>}, {transform_indices = @transform_1, window_bounds = array<i64: 1, 1, 32>}]} {
    %c0 = arith.constant 0 : index
    %c0_0 = arith.constant 0 : index
    %c0_1 = arith.constant 0 : index
    %0 = vector.load %arg2[%c0, %c0_0, %c0_1] : memref<1x1x32xf32, #tpu.memory_space<vmem>>, vector<1x1x32xf32>
    %c0_2 = arith.constant 0 : index
    %c0_3 = arith.constant 0 : index
    %c0_4 = arith.constant 0 : index
    %1 = vector.load %arg3[%c0_2, %c0_3, %c0_4] : memref<1x1x32xf32, #tpu.memory_space<vmem>>, vector<1x1x32xf32>
    tpu.vector_store %arg3[%c0_2, %c0_3, %c0_4], %0 {strides = array<i32>} : memref<1x1x32xf32, #tpu.memory_space<vmem>>, vector<1x1x32xf32>,
    return
  }
  func.func @transform_0(%arg0: i32, %arg1: memref<16xi32, #tpu.memory_space<smem>>) -> (i32, i32, i32) {
    %0 = arith.index_cast %arg0 : i32 to index
    %1 = memref.load %arg1[%0] : memref<16xi32, #tpu.memory_space<smem>>
    %c0_i32 = arith.constant 0 : i32
    %c0_i32_0 = arith.constant 0 : i32
    %c0_i32_1 = arith.constant 0 : i32
    return %1, %c0_i32, %c0_i32_0 : i32, i32, i32
  }
  func.func @transform_1(%arg0: i32, %arg1: memref<16xi32, #tpu.memory_space<smem>>) -> (i32, i32, i32) {
    %c0_i32 = arith.constant 0 : i32
    %c0_i32_0 = arith.constant 0 : i32
    %c0_i32_1 = arith.constant 0 : i32
    return %arg0, %c0_i32, %c0_i32_0 : i32, i32, i32
  }
}

module attributes {stable_mosaic.version = 11 : i64} {
  func.func @kernel(%arg0: i32, %arg1: memref<16x32xf32, #tpu.memory_space<vmem>>, %arg2: memref<16x32xf32, #tpu.memory_space<vmem>>, %arg3: memref<1x32xf32, #tpu.memory_space<vmem>>, %arg4: memref<1x32xf32, #tpu.memory_space<vmem>>, %arg5: memref<16x32xf32, #tpu.memory_space<vmem>>) attributes {dimension_semantics = [#tpu.dimension_semantics<parallel>], iteration_bounds = array<i64: 1>, scalar_prefetch = 0 : i64, scratch_operands = 0 : i64, tpu.core_type = #tpu.core_type<tc>, window_params = [{transform_indices = @transform_0, window_bounds = array<i64: 16, 32>}, {transform_indices = @transform_1, window_bounds = array<i64: 16, 32>}, {pipeline_mode = #tpu.pipeline_mode<synchronous>, transform_indices = @transform_2, window_bounds = array<i64: 1, 32>}, {pipeline_mode = #tpu.pipeline_mode<synchronous>, transform_indices = @transform_3, window_bounds = array<i64: 1, 32>}, {transform_indices = @transform_4, window_bounds = array<i64: 16, 32>}]} {
    %c0 = arith.constant 0 : index
    %c0_0 = arith.constant 0 : index
    %0 = vector.load %arg1[%c0, %c0_0] : memref<16x32xf32, #tpu.memory_space<vmem>>, vector<16x32xf32>
    %c0_1 = arith.constant 0 : index
    %c0_2 = arith.constant 0 : index
    %1 = vector.load %arg2[%c0_1, %c0_2] : memref<16x32xf32, #tpu.memory_space<vmem>>, vector<16x32xf32>
    %2 = arith.addf %0, %1 : vector<16x32xf32>
    %cst = arith.constant dense<0.000000e+00> : vector<16xf32>
    %3 = vector.multi_reduction <add>, %2, %cst [1] : vector<16x32xf32> to vector<16xf32>
    %4 = vector.shape_cast %3 : vector<16xf32> to vector<16x1xf32>
    %cst_3 = arith.constant 3.200000e+01 : f32
    %5 = vector.broadcast %cst_3 : f32 to vector<16x1xf32>
    %6 = arith.divf %4, %5 : vector<16x1xf32>
    %7 = vector.broadcast %6 : vector<16x1xf32> to vector<16x32xf32>
    %8 = arith.subf %2, %7 : vector<16x32xf32>
    %9 = vector.broadcast %6 : vector<16x1xf32> to vector<16x32xf32>
    %10 = arith.subf %2, %9 : vector<16x32xf32>
    %11 = arith.mulf %8, %10 : vector<16x32xf32>
    %cst_4 = arith.constant dense<0.000000e+00> : vector<16xf32>
    %12 = vector.multi_reduction <add>, %11, %cst_4 [1] : vector<16x32xf32> to vector<16xf32>
    %13 = vector.shape_cast %12 : vector<16xf32> to vector<16x1xf32>
    %cst_5 = arith.constant 3.200000e+01 : f32
    %14 = vector.broadcast %cst_5 : f32 to vector<16x1xf32>
    %15 = arith.divf %13, %14 : vector<16x1xf32>
    %16 = vector.broadcast %6 : vector<16x1xf32> to vector<16x32xf32>
    %17 = arith.subf %2, %16 : vector<16x32xf32>
    %cst_6 = arith.constant 9.99999996E-13 : f32
    %18 = vector.broadcast %cst_6 : f32 to vector<16x1xf32>
    %19 = arith.addf %15, %18 : vector<16x1xf32>
    %20 = math.rsqrt %19 : vector<16x1xf32>
    %21 = vector.broadcast %20 : vector<16x1xf32> to vector<16x32xf32>
    %22 = arith.mulf %17, %21 : vector<16x32xf32>
    %c0_7 = arith.constant 0 : index
    %c0_8 = arith.constant 0 : index
    %23 = vector.load %arg3[%c0_7, %c0_8] : memref<1x32xf32, #tpu.memory_space<vmem>>, vector<1x32xf32>
    %24 = vector.broadcast %23 : vector<1x32xf32> to vector<16x32xf32>
    %25 = arith.mulf %22, %24 : vector<16x32xf32>
    %c0_9 = arith.constant 0 : index
    %c0_10 = arith.constant 0 : index
    %26 = vector.load %arg4[%c0_9, %c0_10] : memref<1x32xf32, #tpu.memory_space<vmem>>, vector<1x32xf32>
    %27 = vector.broadcast %26 : vector<1x32xf32> to vector<16x32xf32>
    %28 = arith.addf %25, %27 : vector<16x32xf32>
    %c0_11 = arith.constant 0 : index
    %c0_12 = arith.constant 0 : index
    %29 = vector.load %arg5[%c0_11, %c0_12] : memref<16x32xf32, #tpu.memory_space<vmem>>, vector<16x32xf32>
    tpu.vector_store %arg5[%c0_11, %c0_12], %28 {strides = array<i32>} : memref<16x32xf32, #tpu.memory_space<vmem>>, vector<16x32xf32>,
    return
  }
  func.func @transform_0(%arg0: i32) -> (i32, i32) {
    %c0_i32 = arith.constant 0 : i32
    %c0_i32_0 = arith.constant 0 : i32
    return %arg0, %c0_i32 : i32, i32
  }
  func.func @transform_1(%arg0: i32) -> (i32, i32) {
    %c0_i32 = arith.constant 0 : i32
    %c0_i32_0 = arith.constant 0 : i32
    return %arg0, %c0_i32 : i32, i32
  }
  func.func @transform_2(%arg0: i32) -> (i32, i32) {
    %c0_i32 = arith.constant 0 : i32
    %c0_i32_0 = arith.constant 0 : i32
    %c0_i32_1 = arith.constant 0 : i32
    return %c0_i32, %c0_i32_0 : i32, i32
  }
  func.func @transform_3(%arg0: i32) -> (i32, i32) {
    %c0_i32 = arith.constant 0 : i32
    %c0_i32_0 = arith.constant 0 : i32
    %c0_i32_1 = arith.constant 0 : i32
    return %c0_i32, %c0_i32_0 : i32, i32
  }
  func.func @transform_4(%arg0: i32) -> (i32, i32) {
    %c0_i32 = arith.constant 0 : i32
    %c0_i32_0 = arith.constant 0 : i32
    return %arg0, %c0_i32 : i32, i32
  }
}

module attributes {stable_mosaic.version = 11 : i64} {
  func.func @kernel(%arg0: i32, %arg1: i32, %arg2: i32, %arg3: memref<16x32xf32, #tpu.memory_space<vmem>>, %arg4: memref<32x96xf32, #tpu.memory_space<vmem>>, %arg5: memref<1x96xf32, #tpu.memory_space<vmem>>, %arg6: memref<16x96xf32, #tpu.memory_space<vmem>>, %arg7: memref<16x96xf32, #tpu.memory_space<vmem>>) attributes {dimension_semantics = [#tpu.dimension_semantics<parallel>, #tpu.dimension_semantics<parallel>, #tpu.dimension_semantics<arbitrary>], iteration_bounds = array<i64: 1, 1, 1>, scalar_prefetch = 0 : i64, scratch_operands = 1 : i64, tpu.core_type = #tpu.core_type<tc>, window_params = [{transform_indices = @transform_0, window_bounds = array<i64: 16, 32>}, {transform_indices = @transform_1, window_bounds = array<i64: 32, 96>}, {transform_indices = @transform_2, window_bounds = array<i64: 1, 96>}, {transform_indices = @transform_3, window_bounds = array<i64: 16, 96>}]} {
    %c0_i32 = arith.constant 0 : i32
    %0 = arith.cmpi eq, %arg2, %c0_i32 : i32
    %1 = arith.extui %0 : i1 to i32
    %c0_i32_0 = arith.constant 0 : i32
    %2 = arith.cmpi ne, %1, %c0_i32_0 : i32
    scf.if %2 {
      %cst_10 = arith.constant 0.000000e+00 : f32
      %12 = vector.broadcast %cst_10 : f32 to vector<16x96xf32>
      %c0_11 = arith.constant 0 : index
      %c0_12 = arith.constant 0 : index
      %13 = vector.load %arg7[%c0_11, %c0_12] : memref<16x96xf32, #tpu.memory_space<vmem>>, vector<16x96xf32>
      tpu.vector_store %arg7[%c0_11, %c0_12], %12 {strides = array<i32>} : memref<16x96xf32, #tpu.memory_space<vmem>>, vector<16x96xf32>,
    } else {
    }
    %c0 = arith.constant 0 : index
    %c0_1 = arith.constant 0 : index
    %3 = vector.load %arg7[%c0, %c0_1] : memref<16x96xf32, #tpu.memory_space<vmem>>, vector<16x96xf32>
    %c0_2 = arith.constant 0 : index
    %c0_3 = arith.constant 0 : index
    %4 = vector.load %arg3[%c0_2, %c0_3] : memref<16x32xf32, #tpu.memory_space<vmem>>, vector<16x32xf32>
    %c0_4 = arith.constant 0 : index
    %c0_5 = arith.constant 0 : index
    %5 = vector.load %arg4[%c0_4, %c0_5] : memref<32x96xf32, #tpu.memory_space<vmem>>, vector<32x96xf32>
    %cst = arith.constant dense<0.000000e+00> : vector<16x96xf32>
    %6 = tpu.matmul %4, %5, %cst {dimension_numbers = #tpu.dot_dimension_numbers<[1], [0], [0], [1], [0, 0, 1, 1], [], []>, precision = #tpu.contract_precision<fp32>} : vector<16x32xf32>, vector<32x96xf32>, vector<16x96xf32> -> vector<16x96xf32>
    %7 = arith.addf %3, %6 : vector<16x96xf32>
    %c0_6 = arith.constant 0 : index
    %c0_7 = arith.constant 0 : index
    %8 = vector.load %arg7[%c0_6, %c0_7] : memref<16x96xf32, #tpu.memory_space<vmem>>, vector<16x96xf32>
    tpu.vector_store %arg7[%c0_6, %c0_7], %7 {strides = array<i32>} : memref<16x96xf32, #tpu.memory_space<vmem>>, vector<16x96xf32>,
    %c0_i32_8 = arith.constant 0 : i32
    %9 = arith.cmpi eq, %arg2, %c0_i32_8 : i32
    %10 = arith.extui %9 : i1 to i32
    %c0_i32_9 = arith.constant 0 : i32
    %11 = arith.cmpi ne, %10, %c0_i32_9 : i32
    scf.if %11 {
      %c0_10 = arith.constant 0 : index
      %c0_11 = arith.constant 0 : index
      %12 = vector.load %arg7[%c0_10, %c0_11] : memref<16x96xf32, #tpu.memory_space<vmem>>, vector<16x96xf32>
      %c0_12 = arith.constant 0 : index
      %c0_13 = arith.constant 0 : index
      %13 = vector.load %arg5[%c0_12, %c0_13] : memref<1x96xf32, #tpu.memory_space<vmem>>, vector<1x96xf32>
      %14 = vector.broadcast %13 : vector<1x96xf32> to vector<16x96xf32>
      %15 = arith.addf %12, %14 : vector<16x96xf32>
      %c0_14 = arith.constant 0 : index
      %c0_15 = arith.constant 0 : index
      %16 = vector.load %arg6[%c0_14, %c0_15] : memref<16x96xf32, #tpu.memory_space<vmem>>, vector<16x96xf32>
      tpu.vector_store %arg6[%c0_14, %c0_15], %15 {strides = array<i32>} : memref<16x96xf32, #tpu.memory_space<vmem>>, vector<16x96xf32>,
    } else {
    }
    return
  }
  func.func @transform_0(%arg0: i32, %arg1: i32, %arg2: i32) -> (i32, i32) {
    %c0_i32 = arith.constant 0 : i32
    return %arg0, %arg2 : i32, i32
  }
  func.func @transform_1(%arg0: i32, %arg1: i32, %arg2: i32) -> (i32, i32) {
    %c0_i32 = arith.constant 0 : i32
    return %arg2, %arg1 : i32, i32
  }
  func.func @transform_2(%arg0: i32, %arg1: i32, %arg2: i32) -> (i32, i32) {
    %c0_i32 = arith.constant 0 : i32
    %c0_i32_0 = arith.constant 0 : i32
    return %c0_i32, %arg1 : i32, i32
  }
  func.func @transform_3(%arg0: i32, %arg1: i32, %arg2: i32) -> (i32, i32) {
    %c0_i32 = arith.constant 0 : i32
    return %arg0, %arg1 : i32, i32
  }
}

module attributes {stable_mosaic.version = 11 : i64} {
  func.func @kernel(%arg0: i32, %arg1: i32, %arg2: memref<1x1x8x16xf32, #tpu.memory_space<vmem>>, %arg3: memref<1x1x8x16xf32, #tpu.memory_space<vmem>>, %arg4: memref<1x1x8x16xf32, #tpu.memory_space<vmem>>, %arg5: memref<1x1x8xf32, #tpu.memory_space<vmem>>, %arg6: memref<1x1x8x16xf32, #tpu.memory_space<vmem>>) attributes {dimension_semantics = [#tpu.dimension_semantics<parallel>, #tpu.dimension_semantics<parallel>], iteration_bounds = array<i64: 2, 2>, scalar_prefetch = 0 : i64, scratch_operands = 0 : i64, tpu.core_type = #tpu.core_type<tc>, window_params = [{transform_indices = @transform_0, window_bounds = array<i64: 1, 1, 8, 16>}, {transform_indices = @transform_1, window_bounds = array<i64: 1, 1, 8, 16>}, {transform_indices = @transform_2, window_bounds = array<i64: 1, 1, 8, 16>}, {transform_indices = @transform_3, window_bounds = array<i64: 1, 1, 8>}, {transform_indices = @transform_4, window_bounds = array<i64: 1, 1, 8, 16>}]} {
    %c0 = arith.constant 0 : index
    %c0_0 = arith.constant 0 : index
    %c0_1 = arith.constant 0 : index
    %c0_2 = arith.constant 0 : index
    %0 = vector.load %arg2[%c0, %c0_0, %c0_1, %c0_2] : memref<1x1x8x16xf32, #tpu.memory_space<vmem>>, vector<1x1x8x16xf32>
    %1 = vector.shape_cast %0 : vector<1x1x8x16xf32> to vector<8x16xf32>
    %c0_3 = arith.constant 0 : index
    %c0_4 = arith.constant 0 : index
    %c0_5 = arith.constant 0 : index
    %c0_6 = arith.constant 0 : index
    %2 = vector.load %arg3[%c0_3, %c0_4, %c0_5, %c0_6] : memref<1x1x8x16xf32, #tpu.memory_space<vmem>>, vector<1x1x8x16xf32>
    %3 = vector.shape_cast %2 : vector<1x1x8x16xf32> to vector<8x16xf32>
    %c0_7 = arith.constant 0 : index
    %c0_8 = arith.constant 0 : index
    %c0_9 = arith.constant 0 : index
    %c0_10 = arith.constant 0 : index
    %4 = vector.load %arg4[%c0_7, %c0_8, %c0_9, %c0_10] : memref<1x1x8x16xf32, #tpu.memory_space<vmem>>, vector<1x1x8x16xf32>
    %5 = vector.shape_cast %4 : vector<1x1x8x16xf32> to vector<8x16xf32>
    %cst = arith.constant dense<0.000000e+00> : vector<8x8xf32>
    %6 = tpu.matmul %1, %3, %cst {dimension_numbers = #tpu.dot_dimension_numbers<[1], [1], [0], [0], [0, 0, 1, 0], [], []>, precision = #tpu.contract_precision<fp32>} : vector<8x16xf32>, vector<8x16xf32>, vector<8x8xf32> -> vector<8x8xf32>
    %cst_11 = arith.constant 2.500000e-01 : f32
    %7 = vector.broadcast %cst_11 : f32 to vector<8x8xf32>
    %8 = arith.mulf %6, %7 : vector<8x8xf32>
    %c0_12 = arith.constant 0 : index
    %c0_13 = arith.constant 0 : index
    %c0_14 = arith.constant 0 : index
    %9 = vector.load %arg5[%c0_12, %c0_13, %c0_14] : memref<1x1x8xf32, #tpu.memory_space<vmem>>, vector<1x1x8xf32>
    %10 = vector.shape_cast %9 : vector<1x1x8xf32> to vector<1x8xf32>
    %11 = vector.broadcast %10 : vector<1x8xf32> to vector<8x8xf32>
    %12 = arith.addf %8, %11 : vector<8x8xf32>
    %cst_15 = arith.constant dense<0xFF800000> : vector<8xf32>
    %13 = vector.multi_reduction <maximumf>, %12, %cst_15 [1] : vector<8x8xf32> to vector<8xf32>
    %14 = vector.shape_cast %13 : vector<8xf32> to vector<8x1xf32>
    %15 = vector.broadcast %14 : vector<8x1xf32> to vector<8x8xf32>
    %16 = arith.subf %12, %15 : vector<8x8xf32>
    %17 = math.exp %16 : vector<8x8xf32>
    %cst_16 = arith.constant dense<0.000000e+00> : vector<8xf32>
    %18 = vector.multi_reduction <add>, %17, %cst_16 [1] : vector<8x8xf32> to vector<8xf32>
    %19 = vector.shape_cast %18 : vector<8xf32> to vector<8x1xf32>
    %20 = tpu.reciprocal %19 {approx = true} : vector<8x1xf32> -> vector<8x1xf32>
    %21 = vector.broadcast %20 : vector<8x1xf32> to vector<8x8xf32>
    %22 = arith.mulf %17, %21 : vector<8x8xf32>
    %cst_17 = arith.constant dense<0.000000e+00> : vector<8x16xf32>
    %23 = tpu.matmul %22, %5, %cst_17 {dimension_numbers = #tpu.dot_dimension_numbers<[1], [0], [0], [1], [0, 0, 1, 1], [], []>, precision = #tpu.contract_precision<fp32>} : vector<8x8xf32>, vector<8x16xf32>, vector<8x16xf32> -> vector<8x16xf32>
    %c0_18 = arith.constant 0 : index
    %c0_19 = arith.constant 0 : index
    %c0_20 = arith.constant 0 : index
    %c0_21 = arith.constant 0 : index
    %24 = vector.load %arg6[%c0_18, %c0_19, %c0_20, %c0_21] : memref<1x1x8x16xf32, #tpu.memory_space<vmem>>, vector<1x1x8x16xf32>
    %25 = vector.shape_cast %24 : vector<1x1x8x16xf32> to vector<8x16xf32>
    %26 = vector.shape_cast %23 : vector<8x16xf32> to vector<1x1x8x16xf32>
    tpu.vector_store %arg6[%c0_18, %c0_19, %c0_20, %c0_21], %26 {strides = array<i32>} : memref<1x1x8x16xf32, #tpu.memory_space<vmem>>, vector<1x1x8x16xf32>,
    return
  }
  func.func @transform_0(%arg0: i32, %arg1: i32) -> (i32, i32, i32, i32) {
    %c0_i32 = arith.constant 0 : i32
    %c0_i32_0 = arith.constant 0 : i32
    %c0_i32_1 = arith.constant 0 : i32
    return %arg0, %arg1, %c0_i32, %c0_i32_0 : i32, i32, i32, i32
  }
  func.func @transform_1(%arg0: i32, %arg1: i32) -> (i32, i32, i32, i32) {
    %c0_i32 = arith.constant 0 : i32
    %c0_i32_0 = arith.constant 0 : i32
    %c0_i32_1 = arith.constant 0 : i32
    return %arg0, %arg1, %c0_i32, %c0_i32_0 : i32, i32, i32, i32
  }
  func.func @transform_2(%arg0: i32, %arg1: i32) -> (i32, i32, i32, i32) {
    %c0_i32 = arith.constant 0 : i32
    %c0_i32_0 = arith.constant 0 : i32
    %c0_i32_1 = arith.constant 0 : i32
    return %arg0, %arg1, %c0_i32, %c0_i32_0 : i32, i32, i32, i32
  }
  func.func @transform_3(%arg0: i32, %arg1: i32) -> (i32, i32, i32) {
    %c0_i32 = arith.constant 0 : i32
    %c0_i32_0 = arith.constant 0 : i32
    %c0_i32_1 = arith.constant 0 : i32
    return %arg0, %c0_i32, %c0_i32_0 : i32, i32, i32
  }
  func.func @transform_4(%arg0: i32, %arg1: i32) -> (i32, i32, i32, i32) {
    %c0_i32 = arith.constant 0 : i32
    %c0_i32_0 = arith.constant 0 : i32
    %c0_i32_1 = arith.constant 0 : i32
    return %arg0, %arg1, %c0_i32, %c0_i32_0 : i32, i32, i32, i32
  }
}

module attributes {stable_mosaic.version = 11 : i64} {
  func.func @kernel(%arg0: i32, %arg1: i32, %arg2: i32, %arg3: memref<16x32xf32, #tpu.memory_space<vmem>>, %arg4: memref<32x32xf32, #tpu.memory_space<vmem>>, %arg5: memref<1x32xf32, #tpu.memory_space<vmem>>, %arg6: memref<16x32xf32, #tpu.memory_space<vmem>>, %arg7: memref<16x32xf32, #tpu.memory_space<vmem>>) attributes {dimension_semantics = [#tpu.dimension_semantics<parallel>, #tpu.dimension_semantics<parallel>, #tpu.dimension_semantics<arbitrary>], iteration_bounds = array<i64: 1, 1, 1>, scalar_prefetch = 0 : i64, scratch_operands = 1 : i64, tpu.core_type = #tpu.core_type<tc>, window_params = [{transform_indices = @transform_0, window_bounds = array<i64: 16, 32>}, {transform_indices = @transform_1, window_bounds = array<i64: 32, 32>}, {transform_indices = @transform_2, window_bounds = array<i64: 1, 32>}, {transform_indices = @transform_3, window_bounds = array<i64: 16, 32>}]} {
    %c0_i32 = arith.constant 0 : i32
    %0 = arith.cmpi eq, %arg2, %c0_i32 : i32
    %1 = arith.extui %0 : i1 to i32
    %c0_i32_0 = arith.constant 0 : i32
    %2 = arith.cmpi ne, %1, %c0_i32_0 : i32
    scf.if %2 {
      %cst_10 = arith.constant 0.000000e+00 : f32
      %12 = vector.broadcast %cst_10 : f32 to vector<16x32xf32>
      %c0_11 = arith.constant 0 : index
      %c0_12 = arith.constant 0 : index
      %13 = vector.load %arg7[%c0_11, %c0_12] : memref<16x32xf32, #tpu.memory_space<vmem>>, vector<16x32xf32>
      tpu.vector_store %arg7[%c0_11, %c0_12], %12 {strides = array<i32>} : memref<16x32xf32, #tpu.memory_space<vmem>>, vector<16x32xf32>,
    } else {
    }
    %c0 = arith.constant 0 : index
    %c0_1 = arith.constant 0 : index
    %3 = vector.load %arg7[%c0, %c0_1] : memref<16x32xf32, #tpu.memory_space<vmem>>, vector<16x32xf32>
    %c0_2 = arith.constant 0 : index
    %c0_3 = arith.constant 0 : index
    %4 = vector.load %arg3[%c0_2, %c0_3] : memref<16x32xf32, #tpu.memory_space<vmem>>, vector<16x32xf32>
    %c0_4 = arith.constant 0 : index
    %c0_5 = arith.constant 0 : index
    %5 = vector.load %arg4[%c0_4, %c0_5] : memref<32x32xf32, #tpu.memory_space<vmem>>, vector<32x32xf32>
    %cst = arith.constant dense<0.000000e+00> : vector<16x32xf32>
    %6 = tpu.matmul %4, %5, %cst {dimension_numbers = #tpu.dot_dimension_numbers<[1], [0], [0], [1], [0, 0, 1, 1], [], []>, precision = #tpu.contract_precision<fp32>} : vector<16x32xf32>, vector<32x32xf32>, vector<16x32xf32> -> vector<16x32xf32>
    %7 = arith.addf %3, %6 : vector<16x32xf32>
    %c0_6 = arith.constant 0 : index
    %c0_7 = arith.constant 0 : index
    %8 = vector.load %arg7[%c0_6, %c0_7] : memref<16x32xf32, #tpu.memory_space<vmem>>, vector<16x32xf32>
    tpu.vector_store %arg7[%c0_6, %c0_7], %7 {strides = array<i32>} : memref<16x32xf32, #tpu.memory_space<vmem>>, vector<16x32xf32>,
    %c0_i32_8 = arith.constant 0 : i32
    %9 = arith.cmpi eq, %arg2, %c0_i32_8 : i32
    %10 = arith.extui %9 : i1 to i32
    %c0_i32_9 = arith.constant 0 : i32
    %11 = arith.cmpi ne, %10, %c0_i32_9 : i32
    scf.if %11 {
      %c0_10 = arith.constant 0 : index
      %c0_11 = arith.constant 0 : index
      %12 = vector.load %arg7[%c0_10, %c0_11] : memref<16x32xf32, #tpu.memory_space<vmem>>, vector<16x32xf32>
      %c0_12 = arith.constant 0 : index
      %c0_13 = arith.constant 0 : index
      %13 = vector.load %arg5[%c0_12, %c0_13] : memref<1x32xf32, #tpu.memory_space<vmem>>, vector<1x32xf32>
      %14 = vector.broadcast %13 : vector<1x32xf32> to vector<16x32xf32>
      %15 = arith.addf %12, %14 : vector<16x32xf32>
      %c0_14 = arith.constant 0 : index
      %c0_15 = arith.constant 0 : index
      %16 = vector.load %arg6[%c0_14, %c0_15] : memref<16x32xf32, #tpu.memory_space<vmem>>, vector<16x32xf32>
      tpu.vector_store %arg6[%c0_14, %c0_15], %15 {strides = array<i32>} : memref<16x32xf32, #tpu.memory_space<vmem>>, vector<16x32xf32>,
    } else {
    }
    return
  }
  func.func @transform_0(%arg0: i32, %arg1: i32, %arg2: i32) -> (i32, i32) {
    %c0_i32 = arith.constant 0 : i32
    return %arg0, %arg2 : i32, i32
  }
  func.func @transform_1(%arg0: i32, %arg1: i32, %arg2: i32) -> (i32, i32) {
    %c0_i32 = arith.constant 0 : i32
    return %arg2, %arg1 : i32, i32
  }
  func.func @transform_2(%arg0: i32, %arg1: i32, %arg2: i32) -> (i32, i32) {
    %c0_i32 = arith.constant 0 : i32
    %c0_i32_0 = arith.constant 0 : i32
    return %c0_i32, %arg1 : i32, i32
  }
  func.func @transform_3(%arg0: i32, %arg1: i32, %arg2: i32) -> (i32, i32) {
    %c0_i32 = arith.constant 0 : i32
    return %arg0, %arg1 : i32, i32
  }
}

module attributes {stable_mosaic.version = 11 : i64} {
  func.func @kernel(%arg0: i32, %arg1: i32, %arg2: i32, %arg3: memref<16x32xf32, #tpu.memory_space<vmem>>, %arg4: memref<32x128xf32, #tpu.memory_space<vmem>>, %arg5: memref<1x128xf32, #tpu.memory_space<vmem>>, %arg6: memref<16x128xf32, #tpu.memory_space<vmem>>, %arg7: memref<16x128xf32, #tpu.memory_space<vmem>>) attributes {dimension_semantics = [#tpu.dimension_semantics<parallel>, #tpu.dimension_semantics<parallel>, #tpu.dimension_semantics<arbitrary>], iteration_bounds = array<i64: 1, 1, 1>, scalar_prefetch = 0 : i64, scratch_operands = 1 : i64, tpu.core_type = #tpu.core_type<tc>, window_params = [{transform_indices = @transform_0, window_bounds = array<i64: 16, 32>}, {transform_indices = @transform_1, window_bounds = array<i64: 32, 128>}, {transform_indices = @transform_2, window_bounds = array<i64: 1, 128>}, {transform_indices = @transform_3, window_bounds = array<i64: 16, 128>}]} {
    %c0_i32 = arith.constant 0 : i32
    %0 = arith.cmpi eq, %arg2, %c0_i32 : i32
    %1 = arith.extui %0 : i1 to i32
    %c0_i32_0 = arith.constant 0 : i32
    %2 = arith.cmpi ne, %1, %c0_i32_0 : i32
    scf.if %2 {
      %cst_10 = arith.constant 0.000000e+00 : f32
      %12 = vector.broadcast %cst_10 : f32 to vector<16x128xf32>
      %c0_11 = arith.constant 0 : index
      %c0_12 = arith.constant 0 : index
      %13 = vector.load %arg7[%c0_11, %c0_12] : memref<16x128xf32, #tpu.memory_space<vmem>>, vector<16x128xf32>
      tpu.vector_store %arg7[%c0_11, %c0_12], %12 {strides = array<i32>} : memref<16x128xf32, #tpu.memory_space<vmem>>, vector<16x128xf32>,
    } else {
    }
    %c0 = arith.constant 0 : index
    %c0_1 = arith.constant 0 : index
    %3 = vector.load %arg7[%c0, %c0_1] : memref<16x128xf32, #tpu.memory_space<vmem>>, vector<16x128xf32>
    %c0_2 = arith.constant 0 : index
    %c0_3 = arith.constant 0 : index
    %4 = vector.load %arg3[%c0_2, %c0_3] : memref<16x32xf32, #tpu.memory_space<vmem>>, vector<16x32xf32>
    %c0_4 = arith.constant 0 : index
    %c0_5 = arith.constant 0 : index
    %5 = vector.load %arg4[%c0_4, %c0_5] : memref<32x128xf32, #tpu.memory_space<vmem>>, vector<32x128xf32>
    %cst = arith.constant dense<0.000000e+00> : vector<16x128xf32>
    %6 = tpu.matmul %4, %5, %cst {dimension_numbers = #tpu.dot_dimension_numbers<[1], [0], [0], [1], [0, 0, 1, 1], [], []>, precision = #tpu.contract_precision<fp32>} : vector<16x32xf32>, vector<32x128xf32>, vector<16x128xf32> -> vector<16x128xf32>
    %7 = arith.addf %3, %6 : vector<16x128xf32>
    %c0_6 = arith.constant 0 : index
    %c0_7 = arith.constant 0 : index
    %8 = vector.load %arg7[%c0_6, %c0_7] : memref<16x128xf32, #tpu.memory_space<vmem>>, vector<16x128xf32>
    tpu.vector_store %arg7[%c0_6, %c0_7], %7 {strides = array<i32>} : memref<16x128xf32, #tpu.memory_space<vmem>>, vector<16x128xf32>,
    %c0_i32_8 = arith.constant 0 : i32
    %9 = arith.cmpi eq, %arg2, %c0_i32_8 : i32
    %10 = arith.extui %9 : i1 to i32
    %c0_i32_9 = arith.constant 0 : i32
    %11 = arith.cmpi ne, %10, %c0_i32_9 : i32
    scf.if %11 {
      %c0_10 = arith.constant 0 : index
      %c0_11 = arith.constant 0 : index
      %12 = vector.load %arg7[%c0_10, %c0_11] : memref<16x128xf32, #tpu.memory_space<vmem>>, vector<16x128xf32>
      %c0_12 = arith.constant 0 : index
      %c0_13 = arith.constant 0 : index
      %13 = vector.load %arg5[%c0_12, %c0_13] : memref<1x128xf32, #tpu.memory_space<vmem>>, vector<1x128xf32>
      %14 = vector.broadcast %13 : vector<1x128xf32> to vector<16x128xf32>
      %15 = arith.addf %12, %14 : vector<16x128xf32>
      %cst_14 = arith.constant 5.000000e-01 : f32
      %16 = vector.broadcast %cst_14 : f32 to vector<16x128xf32>
      %17 = arith.mulf %16, %15 : vector<16x128xf32>
      %cst_15 = arith.constant 4.471500e-02 : f32
      %18 = vector.broadcast %cst_15 : f32 to vector<16x128xf32>
      %19 = arith.mulf %18, %15 : vector<16x128xf32>
      %20 = arith.mulf %19, %15 : vector<16x128xf32>
      %21 = arith.mulf %20, %15 : vector<16x128xf32>
      %22 = arith.addf %15, %21 : vector<16x128xf32>
      %cst_16 = arith.constant 0.797884583 : f32
      %23 = vector.broadcast %cst_16 : f32 to vector<16x128xf32>
      %24 = arith.mulf %23, %22 : vector<16x128xf32>
      %25 = math.tanh %24 : vector<16x128xf32>
      %cst_17 = arith.constant 1.000000e+00 : f32
      %26 = vector.broadcast %cst_17 : f32 to vector<16x128xf32>
      %27 = arith.addf %26, %25 : vector<16x128xf32>
      %28 = arith.mulf %17, %27 : vector<16x128xf32>
      %c0_18 = arith.constant 0 : index
      %c0_19 = arith.constant 0 : index
      %29 = vector.load %arg6[%c0_18, %c0_19] : memref<16x128xf32, #tpu.memory_space<vmem>>, vector<16x128xf32>
      tpu.vector_store %arg6[%c0_18, %c0_19], %28 {strides = array<i32>} : memref<16x128xf32, #tpu.memory_space<vmem>>, vector<16x128xf32>,
    } else {
    }
    return
  }
  func.func @transform_0(%arg0: i32, %arg1: i32, %arg2: i32) -> (i32, i32) {
    %c0_i32 = arith.constant 0 : i32
    return %arg0, %arg2 : i32, i32
  }
  func.func @transform_1(%arg0: i32, %arg1: i32, %arg2: i32) -> (i32, i32) {
    %c0_i32 = arith.constant 0 : i32
    return %arg2, %arg1 : i32, i32
  }
  func.func @transform_2(%arg0: i32, %arg1: i32, %arg2: i32) -> (i32, i32) {
    %c0_i32 = arith.constant 0 : i32
    %c0_i32_0 = arith.constant 0 : i32
    return %c0_i32, %arg1 : i32, i32
  }
  func.func @transform_3(%arg0: i32, %arg1: i32, %arg2: i32) -> (i32, i32) {
    %c0_i32 = arith.constant 0 : i32
    return %arg0, %arg1 : i32, i32
  }
}

module attributes {stable_mosaic.version = 11 : i64} {
  func.func @kernel(%arg0: i32, %arg1: i32, %arg2: i32, %arg3: memref<16x128xf32, #tpu.memory_space<vmem>>, %arg4: memref<128x32xf32, #tpu.memory_space<vmem>>, %arg5: memref<1x32xf32, #tpu.memory_space<vmem>>, %arg6: memref<16x32xf32, #tpu.memory_space<vmem>>, %arg7: memref<16x32xf32, #tpu.memory_space<vmem>>) attributes {dimension_semantics = [#tpu.dimension_semantics<parallel>, #tpu.dimension_semantics<parallel>, #tpu.dimension_semantics<arbitrary>], iteration_bounds = array<i64: 1, 1, 1>, scalar_prefetch = 0 : i64, scratch_operands = 1 : i64, tpu.core_type = #tpu.core_type<tc>, window_params = [{transform_indices = @transform_0, window_bounds = array<i64: 16, 128>}, {transform_indices = @transform_1, window_bounds = array<i64: 128, 32>}, {transform_indices = @transform_2, window_bounds = array<i64: 1, 32>}, {transform_indices = @transform_3, window_bounds = array<i64: 16, 32>}]} {
    %c0_i32 = arith.constant 0 : i32
    %0 = arith.cmpi eq, %arg2, %c0_i32 : i32
    %1 = arith.extui %0 : i1 to i32
    %c0_i32_0 = arith.constant 0 : i32
    %2 = arith.cmpi ne, %1, %c0_i32_0 : i32
    scf.if %2 {
      %cst_10 = arith.constant 0.000000e+00 : f32
      %12 = vector.broadcast %cst_10 : f32 to vector<16x32xf32>
      %c0_11 = arith.constant 0 : index
      %c0_12 = arith.constant 0 : index
      %13 = vector.load %arg7[%c0_11, %c0_12] : memref<16x32xf32, #tpu.memory_space<vmem>>, vector<16x32xf32>
      tpu.vector_store %arg7[%c0_11, %c0_12], %12 {strides = array<i32>} : memref<16x32xf32, #tpu.memory_space<vmem>>, vector<16x32xf32>,
    } else {
    }
    %c0 = arith.constant 0 : index
    %c0_1 = arith.constant 0 : index
    %3 = vector.load %arg7[%c0, %c0_1] : memref<16x32xf32, #tpu.memory_space<vmem>>, vector<16x32xf32>
    %c0_2 = arith.constant 0 : index
    %c0_3 = arith.constant 0 : index
    %4 = vector.load %arg3[%c0_2, %c0_3] : memref<16x128xf32, #tpu.memory_space<vmem>>, vector<16x128xf32>
    %c0_4 = arith.constant 0 : index
    %c0_5 = arith.constant 0 : index
    %5 = vector.load %arg4[%c0_4, %c0_5] : memref<128x32xf32, #tpu.memory_space<vmem>>, vector<128x32xf32>
    %cst = arith.constant dense<0.000000e+00> : vector<16x32xf32>
    %6 = tpu.matmul %4, %5, %cst {dimension_numbers = #tpu.dot_dimension_numbers<[1], [0], [0], [1], [0, 0, 1, 1], [], []>, precision = #tpu.contract_precision<fp32>} : vector<16x128xf32>, vector<128x32xf32>, vector<16x32xf32> -> vector<16x32xf32>
    %7 = arith.addf %3, %6 : vector<16x32xf32>
    %c0_6 = arith.constant 0 : index
    %c0_7 = arith.constant 0 : index
    %8 = vector.load %arg7[%c0_6, %c0_7] : memref<16x32xf32, #tpu.memory_space<vmem>>, vector<16x32xf32>
    tpu.vector_store %arg7[%c0_6, %c0_7], %7 {strides = array<i32>} : memref<16x32xf32, #tpu.memory_space<vmem>>, vector<16x32xf32>,
    %c0_i32_8 = arith.constant 0 : i32
    %9 = arith.cmpi eq, %arg2, %c0_i32_8 : i32
    %10 = arith.extui %9 : i1 to i32
    %c0_i32_9 = arith.constant 0 : i32
    %11 = arith.cmpi ne, %10, %c0_i32_9 : i32
    scf.if %11 {
      %c0_10 = arith.constant 0 : index
      %c0_11 = arith.constant 0 : index
      %12 = vector.load %arg7[%c0_10, %c0_11] : memref<16x32xf32, #tpu.memory_space<vmem>>, vector<16x32xf32>
      %c0_12 = arith.constant 0 : index
      %c0_13 = arith.constant 0 : index
      %13 = vector.load %arg5[%c0_12, %c0_13] : memref<1x32xf32, #tpu.memory_space<vmem>>, vector<1x32xf32>
      %14 = vector.broadcast %13 : vector<1x32xf32> to vector<16x32xf32>
      %15 = arith.addf %12, %14 : vector<16x32xf32>
      %c0_14 = arith.constant 0 : index
      %c0_15 = arith.constant 0 : index
      %16 = vector.load %arg6[%c0_14, %c0_15] : memref<16x32xf32, #tpu.memory_space<vmem>>, vector<16x32xf32>
      tpu.vector_store %arg6[%c0_14, %c0_15], %15 {strides = array<i32>} : memref<16x32xf32, #tpu.memory_space<vmem>>, vector<16x32xf32>,
    } else {
    }
    return
  }
  func.func @transform_0(%arg0: i32, %arg1: i32, %arg2: i32) -> (i32, i32) {
    %c0_i32 = arith.constant 0 : i32
    return %arg0, %arg2 : i32, i32
  }
  func.func @transform_1(%arg0: i32, %arg1: i32, %arg2: i32) -> (i32, i32) {
    %c0_i32 = arith.constant 0 : i32
    return %arg2, %arg1 : i32, i32
  }
  func.func @transform_2(%arg0: i32, %arg1: i32, %arg2: i32) -> (i32, i32) {
    %c0_i32 = arith.constant 0 : i32
    %c0_i32_0 = arith.constant 0 : i32
    return %c0_i32, %arg1 : i32, i32
  }
  func.func @transform_3(%arg0: i32, %arg1: i32, %arg2: i32) -> (i32, i32) {
    %c0_i32 = arith.constant 0 : i32
    return %arg0, %arg1 : i32, i32
  }
}

module attributes {stable_mosaic.version = 11 : i64} {
  func.func @_gather_copy_kernel(%arg0: i32, %arg1: memref<8xi32, #tpu.memory_space<smem>>, %arg2: memref<1x1x32xf32, #tpu.memory_space<vmem>>, %arg3: memref<1x1x32xf32, #tpu.memory_space<vmem>>) attributes {dimension_semantics = [#tpu.dimension_semantics<parallel>], iteration_bounds = array<i64: 8>, scalar_prefetch = 1 : i64, scratch_operands = 0 : i64, tpu.core_type = #tpu.core_type<tc>, window_params = [{transform_indices = @transform_0, window_bounds = array<i64: 1, 1, 32>}, {transform_indices = @transform_1, window_bounds = array<i64: 1, 1, 32>}]} {
    %c0 = arith.constant 0 : index
    %c0_0 = arith.constant 0 : index
    %c0_1 = arith.constant 0 : index
    %0 = vector.load %arg2[%c0, %c0_0, %c0_1] : memref<1x1x32xf32, #tpu.memory_space<vmem>>, vector<1x1x32xf32>
    %c0_2 = arith.constant 0 : index
    %c0_3 = arith.constant 0 : index
    %c0_4 = arith.constant 0 : index
    %1 = vector.load %arg3[%c0_2, %c0_3, %c0_4] : memref<1x1x32xf32, #tpu.memory_space<vmem>>, vector<1x1x32xf32>
    tpu.vector_store %arg3[%c0_2, %c0_3, %c0_4], %0 {strides = array<i32>} : memref<1x1x32xf32, #tpu.memory_space<vmem>>, vector<1x1x32xf32>,
    return
  }
  func.func @transform_0(%arg0: i32, %arg1: memref<8xi32, #tpu.memory_space<smem>>) -> (i32, i32, i32) {
    %0 = arith.index_cast %arg0 : i32 to index
    %1 = memref.load %arg1[%0] : memref<8xi32, #tpu.memory_space<smem>>
    %c0_i32 = arith.constant 0 : i32
    %c0_i32_0 = arith.constant 0 : i32
    %c0_i32_1 = arith.constant 0 : i32
    return %1, %c0_i32, %c0_i32_0 : i32, i32, i32
  }
  func.func @transform_1(%arg0: i32, %arg1: memref<8xi32, #tpu.memory_space<smem>>) -> (i32, i32, i32) {
    %c0_i32 = arith.constant 0 : i32
    %c0_i32_0 = arith.constant 0 : i32
    %c0_i32_1 = arith.constant 0 : i32
    return %arg0, %c0_i32, %c0_i32_0 : i32, i32, i32
  }
}

</mosaic_0001>

<bundles_post_ra>
// kernel: _lambda_.17
= control target key start
LH: loop header
LB: loop body
LE: loop exit
PB: predicated region body
PF: predicated region fallthrough
CT: control target
= control target key end

     0   :  { %s231_s0 = inlined_call_operand.vmem [shape: s32[16], index: 0, kind: input, shape index: {}]   ;;  %s232_s1 = inlined_call_operand.vmem [shape: f32[64,1,32], index: 1, kind: input, shape index: {}]   ;;  %s233_s2 = inlined_call_operand.vmem [shape: f32[16,1,32], index: 2, kind: output, shape index: {}]  }
   0x1   :  { %s7_s11 = sshll.u32 %s231_s0, 4  ;;  %s8_s11 = int_to_ptr.vmem [resolvable:$true] %s7_s11 }
   0x2   :  { %s184_s12 = scalar_lea.vmem %s8_s11, 16  ;;  %p189_p1 = scmp.lt.s32.totalorder %s8_s11, %s8_s11 }
   0x3   :  { %p185_p0 = scmp.ne.s32.totalorder %s8_s11, %s184_s12  ;;  %p190_p2 = scmp.lt.s32.totalorder %s184_s12, %s184_s12 }
   0x5   :  { %p191_p3 = por %p190_p2, %p189_p1 }
   0x7   :  { %p192_p4 = pnand %p191_p3, %p185_p0 }
   0x9   :  { %195 = shalt.err (!%p192_p4)  }
   0xa   :  { %s206_s13 = smov [#allocation3]  }
   0xb   :  { %10 = dma.vmem_to_smem %s8_s11, 16, %s206_s13, [#allocation2] }
   0xc   :  { %200 = dma.done.wait [#allocation2], 16 }
   0xd   :  { %201 = vsyncadd [#allocation2], 4294967280 }
   0xe   :  { %12 = sfence }
   0xf   :  { %s202_s14 = smov 0  }
  0x10 LB: > { %s168_s15 = sadd.s32 4294967295, %s204_s14   ;;  %p172_p5 = scmp.ge.s32.totalorder %s204_s14, 1  ;;  %s204_s14 = sphi %s202_s14, %s18_s14  }
  0x11   : > { %p96_p6 = scmp.lt.s32.totalorder %s204_s14, 17 }
  0x13   : > { %p97_p7 = pnand %p172_p5, %p96_p6 }
  0x14   : > { %s113_s0 = sld [smem:[#allocation3 + %s168_s15]] (!%p97_p7)  ;;  %p118_p8 = scmp.lt.s32.totalorder (!%p97_p7), %s168_s15, 15 }
  0x15   : > { %100 = sbr.rel (%p97_p7) target bundleno = 32 (0x20), region = 24 }
  0x1a   : > { %s235_s15 = smov (!%p118_p8, %s168_s15), 15  ;;  %p114_p9 = scmp.lt.s32.totalorder %s113_s0, 63  ;;  %vm122_vm0 = vcmask 253952  }
  0x1b   : > { %s120_s18 = scalar_lea.vmem %s233_s2, %s235_s15 }
  0x1c   : > { %s237_s0 = smov (!%p114_p9, %s113_s0), 63 }
  0x1d   : > { %s116_s21 = scalar_lea.vmem %s232_s1, %s237_s0 }
  0x1e   : > { %v121_v0 = vld [vmem:[%s116_s21] sm:$0x1] }
  0x1f   : > { %123 = vst.msk [vmem:[%s120_s18] sm:$0x1] %vm122_vm0, %v121_v0 }
  0x20 PF: > { %s18_s14 = sadd.s32 1, %s204_s14  }
  0x21   : > { %p15_p10 = scmp.ge.s32.totalorder %s18_s14, 18  }
  0x23   :  { %17 = sbr.rel (!%p15_p10) target bundleno = 16 (0x10), region = 54 }

// kernel: _lambda_.18
= control target key start
LH: loop header
LB: loop body
LE: loop exit
PB: predicated region body
PF: predicated region fallthrough
CT: control target
= control target key end

     0   :  { %vm23_vm0 = vcmask 261120   ;;  %s136_s0 = inlined_call_operand.vmem [shape: f32[16,32], index: 0, kind: input, shape index: {}]   ;;  %s137_s1 = inlined_call_operand.vmem [shape: f32[16,32], index: 1, kind: input, shape index: {}]   ;;  %s138_s2 = inlined_call_operand.vmem [shape: f32[1,32], index: 2, kind: input, shape index: {}]   ;;  %s139_s3 = inlined_call_operand.vmem [shape: f32[1,32], index: 3, kind: input, shape index: {}]   ;;  %s140_s4 = inlined_call_operand.vmem [shape: f32[16,32], index: 4, kind: output, shape index: {}]  }
   0x1   :  { %v17_v0 = vld [vmem:[%s136_s0] sm:$0xff]  ;;  %v18_v2 = vld [vmem:[%s136_s0 + $0x8] sm:$0xff] }
   0x2   :  { %v19_v1 = vld [vmem:[%s137_s1] sm:$0xff]  ;;  %v20_v4 = vld [vmem:[%s137_s1 + $0x8] sm:$0xff] }
   0x3   :  { %v21_v3 = vadd.f32 %v19_v1, %v17_v0  ;;  %v22_v5 = vadd.f32 %v20_v4, %v18_v2  ;;  %v75_v25 = vld [vmem:[%s138_s2] ss:$0 sm:$0xff] }
   0x4   :  { %v76_v27 = vld [vmem:[%s139_s3] ss:$0 sm:$0xff] }
   0x5   :  { %v24_v6 = vsel %vm23_vm0, %v21_v3, 0.0  ;;  %v27_v7 = vsel %vm23_vm0, %v22_v5, 0.0 }
   0x6   :  { %25 = vadd.xlane.f32.xlu0 %v24_v6 }
   0xa   :  { %28 = vadd.xlane.f32.xlu0 %v27_v7 }
  0x8f   :  { %v26_v8 = vpop.xlane.xlu0 %25 }
  0x90   :  { %v31_v9 = vmul.f32 0.03125, %v26_v8 }
  0x92   :  { %v33_v10 = vsub.f32 %v21_v3, %v31_v9 }
  0x93   :  { %v29_v11 = vpop.xlane.xlu0 %28 }
  0x94   :  { %v32_v12 = vmul.f32 0.03125, %v29_v11  ;;  %v35_v13 = vmul.f32 %v33_v10, %v33_v10 }
  0x96   :  { %v34_v14 = vsub.f32 %v22_v5, %v32_v12  ;;  %v37_v15 = vsel %vm23_vm0, %v35_v13, 0.0 }
  0x97   :  { %38 = vadd.xlane.f32.xlu1 %v37_v15 }
  0x98   :  { %v36_v16 = vmul.f32 %v34_v14, %v34_v14 }
  0x9a   :  { %v40_v17 = vsel %vm23_vm0, %v36_v16, 0.0 }
  0x9b   :  { %41 = vadd.xlane.f32.xlu1 %v40_v17 }
 0x120   :  { %v39_v18 = vpop.xlane.xlu1 %38 }
 0x121   :  { %v43_v19 = vmul.f32 0.03125, %v39_v18 }
 0x123   :  { %v45_v20 = vadd.f32 1e-12, %v43_v19 }
 0x124   :  { %v42_v21 = vpop.xlane.xlu1 %41 }
 0x125   :  { %77 = vrsqrt.f32 %v45_v20  ;;  %v44_v22 = vmul.f32 0.03125, %v42_v21 }
 0x127   :  { %v46_v23 = vadd.f32 1e-12, %v44_v22 }
 0x129   :  { %79 = vrsqrt.f32 %v46_v23 }
 0x132   :  { %v78_v24 = vpop.eup %77 }
 0x133   :  { %v49_v26 = vmul.f32 %v78_v24, %v33_v10 }
 0x135   :  { %v58_v28 = vmul.f32 %v75_v25, %v49_v26 }
 0x136   :  { %v80_v29 = vpop.eup %79 }
 0x137   :  { %v67_v30 = vadd.f32 %v76_v27, %v58_v28  ;;  %v50_v31 = vmul.f32 %v80_v29, %v34_v14 }
 0x139   :  { %69 = vst.msk [vmem:[%s140_s4] sm:$0xff] %vm23_vm0, %v67_v30  ;;  %v59_v32 = vmul.f32 %v75_v25, %v50_v31 }
 0x13b   :  { %v68_v33 = vadd.f32 %v76_v27, %v59_v32 }
 0x13d   :  { %70 = vst.msk [vmem:[%s140_s4 + $0x8] sm:$0xff] %vm23_vm0, %v68_v33 }

// kernel: _lambda_.19
= control target key start
LH: loop header
LB: loop body
LE: loop exit
PB: predicated region body
PF: predicated region fallthrough
CT: control target
= control target key end

     0   :  { %vm29_vm0 = vcmask 261120   ;;  %vm18_vm1 = vcmask 785408   ;;  %v693_v38 = vmov 0.0   ;;  %s795_s1 = inlined_call_operand.vmem [shape: f32[32,96], index: 1, kind: input, shape index: {}]   ;;  %s796_s0 = inlined_call_operand.vmem [shape: f32[16,32], index: 0, kind: input, shape index: {}]   ;;  %s797_s2 = inlined_call_operand.vmem [shape: f32[1,96], index: 2, kind: input, shape index: {}]   ;;  %s798_s3 = inlined_call_operand.vmem [shape: f32[16,96], index: 3, kind: output, shape index: {}]  }
   0x1   :  { %v28_v0 = vld [vmem:[%s795_s1 + $0x18] sm:$0xff]  ;;  %v27_v1 = vld [vmem:[%s795_s1 + $0x10] sm:$0xff]  ;;  %v26_v2 = vld [vmem:[%s795_s1 + $0x8] sm:$0xff]  ;;  %20 = vst.msk [vmem:[#allocation2 + $0x8] sm:$0xff] %vm18_vm1, %v693_v38 }
   0x2   :  { %v723_v3 = vand.u32 4294901760, %v28_v0  ;;  %v725_v4 = vand.u32 4294901760, %v27_v1  ;;  %v727_v5 = vand.u32 4294901760, %v26_v2  ;;  %v25_v6 = vld [vmem:[%s795_s1] sm:$0xff]  ;;  %v24_v8 = vld [vmem:[%s796_s0 + $0x8] sm:$0xff]  ;;  %19 = vst.msk [vmem:[#allocation2] sm:$0xff] %vm18_vm1, %v693_v38 }
   0x3   :  { %v23_v7 = vld [vmem:[%s796_s0] sm:$0xff]  ;;  %v738_v9 = vand.u32 4294901760, %v25_v6  ;;  %v34_v11 = vsel %vm29_vm0, %v24_v8, 0 }
   0x4   :  { %v31_v10 = vsel %vm29_vm0, %v23_v7, 0  ;;  %626 = vmatprep.subr.mxu0 %v723_v3  ;;  %v151_v12 = vsub.f32 %v28_v0, %v723_v3  ;;  %v744_v14 = vand.u32 4294901760, %v34_v11  ;;  %v158_v15 = vsub.f32 %v27_v1, %v725_v4  ;;  %v589_v1 = vld [vmem:[%s797_s2] ss:$0 sm:$0xff] }
   0x5   :  { %v742_v13 = vand.u32 4294901760, %v31_v10  ;;  %627 = vmatpush3.msra.mxu0 %v723_v3  ;;  %v165_v16 = vsub.f32 %v26_v2, %v727_v5  ;;  %v172_v17 = vsub.f32 %v25_v6, %v738_v9 }
   0x6   :  { %628 = vmatprep.subr.mxu0 %v725_v4  ;;  %v152_v18 = vand.u32 4294901760, %v151_v12  ;;  %v159_v20 = vand.u32 4294901760, %v158_v15  ;;  %v116_v21 = vsub.f32 %v34_v11, %v744_v14 }
   0x7   :  { %v106_v19 = vsub.f32 %v31_v10, %v742_v13  ;;  %645 = vmatprep.mubr.f32.mxu1 %v742_v13  ;;  %629 = vmatpush3.msra.mxu0 %v725_v4  ;;  %v166_v22 = vand.u32 4294901760, %v165_v16  ;;  %v173_v23 = vand.u32 4294901760, %v172_v17 }
   0x8   :  { %630 = vmatprep.subr.mxu0 %v727_v5  ;;  %v153_v24 = vsub.f32 %v151_v12, %v152_v18  ;;  %v160_v26 = vsub.f32 %v158_v15, %v159_v20  ;;  %v117_v27 = vand.u32 4294901760, %v116_v21  ;;  %v22_v56 = vld [vmem:[#allocation2 + $0x8] sm:$0xff] }
   0x9   :  { %v107_v25 = vand.u32 4294901760, %v106_v19  ;;  %631 = vmatpush3.msra.mxu0 %v727_v5  ;;  %v167_v28 = vsub.f32 %v165_v16, %v166_v22  ;;  %v174_v29 = vsub.f32 %v172_v17, %v173_v23  ;;  %v21_v60 = vld [vmem:[#allocation2] sm:$0xff] }
   0xa   :  { %632 = vmatprep.subr.mxu0 %v738_v9  ;;  %v154_v30 = vand.u32 4294901760, %v153_v24  ;;  %v161_v32 = vand.u32 4294901760, %v160_v26  ;;  %v118_v33 = vsub.f32 %v116_v21, %v117_v27 }
   0xb   :  { %v108_v31 = vsub.f32 %v106_v19, %v107_v25  ;;  %633 = vmatpush3.msra.mxu0 %v738_v9  ;;  %v168_v36 = vand.u32 4294901760, %v167_v28  ;;  %v175_v37 = vand.u32 4294901760, %v174_v29 }
   0xc   :  { %637 = vmatprep.subr.mxu1 %v154_v30  ;;  %648 = vmatprep.subr.mxu0 %v151_v12  ;;  %v119_v35 = vand.u32 4294901760, %v118_v33 }
   0xd   :  { %v109_v34 = vand.u32 4294901760, %v108_v31  ;;  %638 = vmatpush3.msra.mxu1 %v154_v30 }
   0xe   :  { %639 = vmatprep.subr.mxu1 %v161_v32 }
   0xf   :  { %634 = vmatprep.mubr.f32.mxu0 %v109_v34  ;;  %640 = vmatpush3.msra.mxu1 %v161_v32 }
  0x10   :  { %635 = vmatmul.mubr.f32.vlgmr.msra.gmra.mxu0 %v119_v35  ;;  %641 = vmatprep.subr.mxu1 %v168_v36 }
  0x11   :  { %649 = vmatpush3.msra.mxu0 %v151_v12  ;;  %642 = vmatpush3.msra.mxu1 %v168_v36 }
  0x12   :  { %650 = vmatprep.subr.mxu0 %v158_v15  ;;  %643 = vmatprep.subr.mxu1 %v175_v37 }
  0x13   :  { %651 = vmatpush3.msra.mxu0 %v158_v15  ;;  %644 = vmatpush3.msra.mxu1 %v175_v37 }
  0x14   :  { %652 = vmatprep.subr.mxu0 %v165_v16  ;;  %646 = vmatmul.mubr.f32.vlgmr.msra.gmra.mxu1 %v744_v14 }
  0x15   :  { %653 = vmatpush3.msra.mxu0 %v165_v16  ;;  %659 = vmatprep.subr.mxu1 %v723_v3 }
  0x16   :  { %654 = vmatprep.subr.mxu0 %v172_v17  ;;  %656 = vmatprep.mubr.f32.mxu0 %v106_v19 }
  0x17   :  { %655 = vmatpush3.msra.mxu0 %v172_v17  ;;  %660 = vmatpush3.msra.mxu1 %v723_v3 }
  0x18   :  { %657 = vmatmul.mubr.f32.vlgmr.msra.gmra.mxu0 %v116_v21  ;;  %661 = vmatprep.subr.mxu1 %v725_v4 }
  0x19   :  { %670 = vmatprep.subr.mxu0 %v152_v18  ;;  %662 = vmatpush3.msra.mxu1 %v725_v4 }
  0x1a   :  { %671 = vmatpush3.msra.mxu0 %v152_v18  ;;  %663 = vmatprep.subr.mxu1 %v727_v5 }
  0x1b   :  { %672 = vmatprep.subr.mxu0 %v159_v20  ;;  %664 = vmatpush3.msra.mxu1 %v727_v5 }
  0x1c   :  { %673 = vmatpush3.msra.mxu0 %v159_v20  ;;  %665 = vmatprep.subr.mxu1 %v738_v9 }
  0x1d   :  { %674 = vmatprep.subr.mxu0 %v166_v22  ;;  %666 = vmatpush3.msra.mxu1 %v738_v9 }
  0x1e   :  { %667 = vmatprep.mubr.f32.mxu1 %v107_v25  ;;  %675 = vmatpush3.msra.mxu0 %v166_v22 }
  0x1f   :  { %668 = vmatmul.mubr.f32.vlgmr.msra.gmra.mxu1 %v117_v27  ;;  %676 = vmatprep.subr.mxu0 %v173_v23 }
  0x20   :  { %681 = vmatprep.subr.mxu1 %v723_v3  ;;  %677 = vmatpush3.msra.mxu0 %v173_v23 }
  0x21   :  { %678 = vmatprep.mubr.f32.mxu0 %v742_v13  ;;  %682 = vmatpush3.msra.mxu1 %v723_v3 }
  0x22   :  { %679 = vmatmul.mubr.f32.vlgmr.msra.gmra.mxu0 %v744_v14  ;;  %683 = vmatprep.subr.mxu1 %v725_v4 }
  0x23   :  { %689 = vmatprep.mubr.f32.mxu1 %v742_v13  ;;  %684 = vmatpush3.msra.mxu1 %v725_v4 }
  0x24   :  { %685 = vmatprep.subr.mxu1 %v727_v5 }
  0x25   :  { %686 = vmatpush3.msra.mxu1 %v727_v5 }
  0x26   :  { %687 = vmatprep.subr.mxu1 %v738_v9 }
  0x27   :  { %688 = vmatpush3.msra.mxu1 %v738_v9 }
  0x28   :  { %690 = vmatmul.mubr.f32.vlgmr.msra.gmra.mxu1 %v744_v14 }
  0xd0   :  { %v636_v39 = vpop.f32.mrf.mxu0 }
  0xd2   :  { %v111_v40 = vpop.f32.mrf.mxu0 }
  0xd4   :  { %v647_v41 = vpop.f32.mrf.mxu1 }
  0xd5   :  { %v219_v44 = vadd.f32 %v647_v41, %v636_v39 }
  0xd6   :  { %v212_v42 = vpop.f32.mrf.mxu1 }
  0xd7   :  { %v213_v46 = vadd.f32 %v212_v42, %v111_v40 }
  0xd8   :  { %v658_v43 = vpop.f32.mrf.mxu0 }
  0xd9   :  { %v306_v48 = vadd.f32 %v658_v43, %v219_v44 }
  0xda   :  { %v298_v47 = vpop.f32.mrf.mxu0 }
  0xdb   :  { %v299_v51 = vadd.f32 %v298_v47, %v213_v46 }
  0xdf   :  { %v669_v45 = vpop.f32.mrf.mxu1 }
  0xe0   :  { %v391_v52 = vadd.f32 %v669_v45, %v306_v48 }
  0xe1   :  { %v382_v49 = vpop.f32.mrf.mxu1 }
  0xe2   :  { %v680_v50 = vpop.f32.mrf.mxu0  ;;  %v383_v53 = vadd.f32 %v382_v49, %v299_v51 }
  0xe3   :  { %v480_v55 = vadd.f32 %v680_v50, %v391_v52 }
  0xe4   :  { %v473_v54 = vpop.f32.mrf.mxu0 }
  0xe5   :  { %v474_v58 = vadd.f32 %v473_v54, %v383_v53 }
  0xe8   :  { %v691_v57 = vpop.f32.mrf.mxu1 }
  0xe9   :  { %v561_v59 = vadd.f32 %v691_v57, %v480_v55 }
  0xea   :  { %v554_v61 = vpop.f32.mrf.mxu1 }
  0xeb   :  { %v565_v62 = vadd.f32 %v561_v59, %v22_v56  ;;  %v555_v63 = vadd.f32 %v554_v61, %v474_v58 }
  0xed   :  { %568 = vst.msk [vmem:[#allocation2 + $0x8] sm:$0xff] %vm18_vm1, %v565_v62  ;;  %v564_v0 = vadd.f32 %v555_v63, %v21_v60 }
  0xef   :  { %567 = vst.msk [vmem:[#allocation2] sm:$0xff] %vm18_vm1, %v564_v0 }
  0xf4   :  { %v573_v2 = vld [vmem:[#allocation2 + $0x8] sm:$0xff] }
  0xf5   :  { %v582_v3 = vadd.f32 %v589_v1, %v573_v2 }
  0xf6   :  { %v572_v4 = vld [vmem:[#allocation2] sm:$0xff] }
  0xf7   :  { %584 = vst.msk [vmem:[%s798_s3 + $0x8] sm:$0xff] %vm18_vm1, %v582_v3  ;;  %v581_v5 = vadd.f32 %v589_v1, %v572_v4 }
  0xf9   :  { %583 = vst.msk [vmem:[%s798_s3] sm:$0xff] %vm18_vm1, %v581_v5 }

// kernel: _lambda_.20
= control target key start
LH: loop header
LB: loop body
LE: loop exit
PB: predicated region body
PF: predicated region fallthrough
CT: control target
= control target key end

     0   :  { %s1576_s15 = smov 0   ;;  %s1578_s16 = smov 0   ;;  %s1688_s0 = inlined_call_operand.vmem [shape: f32[2,2,8,16], index: 0, kind: input, shape index: {}]   ;;  %s1689_s1 = inlined_call_operand.vmem [shape: f32[2,2,8,16], index: 1, kind: input, shape index: {}]   ;;  %s1690_s2 = inlined_call_operand.vmem [shape: f32[2,2,8,16], index: 2, kind: input, shape index: {}]   ;;  %s1691_s3 = inlined_call_operand.vmem [shape: f32[2,1,8], index: 3, kind: input, shape index: {}]   ;;  %s1692_s4 = inlined_call_operand.vmem [shape: f32[2,2,8,16], index: 4, kind: output, shape index: {}]  }
   0x1   :  { %s1580_s17 = smov 0   ;;  %s1582_s18 = smov 0  }
   0x2   :  { %s1584_s19 = smov 0  }
   0x3 LB: > { %s23_s20 = sadd.s32 1, %s1539_s17  ;;  %s26_s21 = sadd.s32 1, %s1543_s18  ;;  %s1547_s19 = sphi %s1584_s19, %s14_s19   ;;  %s1543_s18 = sphi %s1582_s18, %s1696_s18   ;;  %s1539_s17 = sphi %s1580_s17, %s1695_s17   ;;  %s1535_s16 = sphi %s1578_s16, %s1694_s16   ;;  %s1531_s15 = sphi %s1576_s15, %s1693_s15  }
   0x4   : > { %p24_p0 = scmp.ge.s32.totalorder %s23_s20, 2  ;;  %p1367_p1 = scmp.ge.s32.totalorder %s1547_s19, 1 }
   0x5   : > { %p219_p2 = scmp.lt.s32.totalorder %s1547_s19, 5 }
   0x6   : > { %s1698_s20 = smov (%p24_p0, %s23_s20), 0  ;;  %s1700_s21 = smov (!%p24_p0, %s26_s21), %s1543_s18 }
   0x7   : > { %p220_p3 = pnand %p1367_p1, %p219_p2  ;;  %p28_p4 = scmp.ge.s32.totalorder %s1700_s21, 2 }
   0x8   : > { %p270_p5 = scmp.lt.s32.totalorder (!%p220_p3), %s1535_s16, 1  ;;  %p272_p6 = scmp.lt.s32.totalorder (!%p220_p3), %s1531_s15, 1 }
   0x9   : > { %s1702_s21 = smov (%p28_p4, %s1700_s21), 0  ;;  %223 = sbr.rel (%p220_p3) target bundleno = 770 (0x302), region = 36 }
   0xe   : > { %v1549_v0 = vmov 0.0   ;;  %vm1550_vm0 = vmmov 0   ;;  %s1704_s16 = smov (!%p270_p5, %s1535_s16), 1  ;;  %s1706_s15 = smov (!%p272_p6, %s1531_s15), 1  ;;  %vm308_vm1 = vcmask 130048   ;;  %vm770_vm2 = vcmask 64512  }
   0xf   : > { %1403 = vmatprep.subr.mxu0 %v1549_v0  ;;  %1405 = vmatprep.mubr.msk.f32.mxu0 %vm1550_vm0, %v1549_v0  ;;  %s1368_s22 = sshll.u32 %s1704_s16, 1  ;;  %s296_s7 = scalar_lea.vmem %s1691_s3, %s1704_s16 }
  0x10   : > { %1408 = vmatprep.subr.mxu1 %v1549_v0  ;;  %1410 = vmatprep.mubr.msk.f32.mxu1 %vm1550_vm0, %v1549_v0  ;;  %s275_s23 = sadd.s32 %s1368_s22, %s1706_s15  ;;  %v1376_v32 = vld [vmem:[%s296_s7] ss:$0 sm:$0xff] }
  0x11   : > { %s1615_s24 = sshll.u32 %s275_s23, 3 }
  0x12   : > { %s285_s27 = scalar_lea.vmem %s1689_s1, %s1615_s24  ;;  %s277_s30 = scalar_lea.vmem %s1688_s0, %s1615_s24 }
  0x13   : > { %v306_v1 = vld [vmem:[%s285_s27] sm:$0xff]  ;;  %s293_s10 = scalar_lea.vmem %s1690_s2, %s1615_s24  ;;  %s304_s13 = scalar_lea.vmem %s1692_s4, %s1615_s24 }
  0x14   : > { %v305_v2 = vld [vmem:[%s277_s30] sm:$0xff]  ;;  %v313_v3 = vsel %vm308_vm1, %v306_v1, 0 }
  0x15   : > { %v310_v4 = vsel %vm308_vm1, %v305_v2, 0  ;;  %v346_v5 = vand.u32 4294901760, %v313_v3  ;;  %v307_v41 = vld [vmem:[%s293_s10] sm:$0xff] }
  0x16   : > { %v381_v6 = vand.u32 4294901760, %v310_v4  ;;  %v816_v42 = vand.u32 4294901760, %v307_v41 }
  0x17   : > { %1404 = vmatpush3.xpose.msra.mxu0 %v346_v5  ;;  %v423_v8 = vsub.f32 %v313_v3, %v346_v5 }
  0x18   : > { %v382_v7 = vsub.f32 %v310_v4, %v381_v6  ;;  %1413 = vmatprep.subr.mxu0 %v1549_v0  ;;  %v893_v43 = vsub.f32 %v307_v41, %v816_v42 }
  0x19   : > { %v424_v10 = vand.u32 4294901760, %v423_v8 }
  0x1a   : > { %v383_v9 = vand.u32 4294901760, %v382_v7  ;;  %v894_v44 = vand.u32 4294901760, %v893_v43 }
  0x1b   : > { %v425_v12 = vsub.f32 %v423_v8, %v424_v10 }
  0x1c   : > { %v384_v11 = vsub.f32 %v382_v7, %v383_v9  ;;  %v895_v45 = vsub.f32 %v893_v43, %v894_v44 }
  0x1d   : > { %v426_v14 = vand.u32 4294901760, %v425_v12 }
  0x1e   : > { %v385_v13 = vand.u32 4294901760, %v384_v11  ;;  %v896_v46 = vand.u32 4294901760, %v895_v45 }
  0x1f   : > { %1409 = vmatpush3.xpose.msra.mxu1 %v426_v14 }
  0x20   : > { %1406 = vmatmul.mubr.f32.vlgmr.msra.gmra.mxu0 %v385_v13  ;;  %1418 = vmatprep.subr.mxu1 %v1549_v0 }
  0x21   : > { %1414 = vmatpush3.xpose.msra.mxu0 %v423_v8  ;;  %1415 = vmatprep.mubr.msk.f32.mxu0 %vm1550_vm0, %v1549_v0 }
  0x22   : > { %1423 = vmatprep.subr.mxu0 %v1549_v0  ;;  %1411 = vmatmul.mubr.f32.vlgmr.msra.gmra.mxu1 %v381_v6 }
  0x23   : > { %1419 = vmatpush3.xpose.msra.mxu1 %v346_v5  ;;  %1420 = vmatprep.mubr.msk.f32.mxu1 %vm1550_vm0, %v1549_v0 }
  0x24   : > { %1416 = vmatmul.mubr.f32.vlgmr.msra.gmra.mxu0 %v382_v7  ;;  %1428 = vmatprep.subr.mxu1 %v1549_v0 }
  0x25   : > { %1424 = vmatpush3.xpose.msra.mxu0 %v424_v10  ;;  %1425 = vmatprep.mubr.msk.f32.mxu0 %vm1550_vm0, %v1549_v0 }
  0x26   : > { %1421 = vmatmul.mubr.f32.vlgmr.msra.gmra.mxu1 %v383_v9  ;;  %1433 = vmatprep.subr.mxu0 %v1549_v0 }
  0x27   : > { %1429 = vmatpush3.xpose.msra.mxu1 %v346_v5  ;;  %1430 = vmatprep.mubr.msk.f32.mxu1 %vm1550_vm0, %v1549_v0 }
  0x28   : > { %1426 = vmatmul.mubr.f32.vlgmr.msra.gmra.mxu0 %v381_v6  ;;  %1438 = vmatprep.subr.mxu1 %v1549_v0 }
  0x29   : > { %1435 = vmatprep.mubr.msk.f32.mxu0 %vm1550_vm0, %v1549_v0  ;;  %1434 = vmatpush3.msra.mxu0 %v816_v42 }
  0x2a   : > { %1431 = vmatmul.mubr.f32.vlgmr.msra.gmra.mxu1 %v381_v6  ;;  %1443 = vmatprep.subr.mxu0 %v1549_v0 }
  0x2b   : > { %1440 = vmatprep.mubr.msk.f32.mxu1 %vm1550_vm0, %v1549_v0  ;;  %1439 = vmatpush3.msra.mxu1 %v896_v46 }
  0x2c   : > { %1448 = vmatprep.subr.mxu1 %v1549_v0 }
  0xe0   : > { %v387_v15 = vpop.f32.mrf.mxu0 }
  0xe2   : > { %v1407_v16 = vpop.f32.mrf.mxu0  ;;  %v463_v17 = vpop.f32.mrf.mxu1 }
  0xe3   : > { %v464_v18 = vadd.f32 %v463_v17, %v387_v15 }
  0xe4   : > { %v537_v19 = vpop.f32.mrf.mxu0  ;;  %v1412_v20 = vpop.f32.mrf.mxu1 }
  0xe5   : > { %v538_v21 = vadd.f32 %v537_v19, %v464_v18 }
  0xe6   : > { %v1417_v22 = vpop.f32.mrf.mxu0  ;;  %v611_v23 = vpop.f32.mrf.mxu1 }
  0xe7   : > { %v612_v24 = vadd.f32 %v611_v23, %v538_v21 }
  0xe8   : > { %v685_v25 = vpop.f32.mrf.mxu0  ;;  %v1422_v26 = vpop.f32.mrf.mxu1 }
  0xe9   : > { %v686_v27 = vadd.f32 %v685_v25, %v612_v24 }
  0xea   : > { %v1427_v28 = vpop.f32.mrf.mxu0  ;;  %v757_v29 = vpop.f32.mrf.mxu1 }
  0xeb   : > { %v758_v30 = vadd.f32 %v757_v29, %v686_v27 }
  0xec   : > { %v1432_v31 = vpop.f32.mrf.mxu1 }
  0xed   : > { %v761_v33 = vmul.f32 0.25, %v758_v30 }
  0xef   : > { %v769_v34 = vadd.f32 %v1376_v32, %v761_v33 }
  0xf1   : > { %v771_v35 = vsel %vm770_vm2, %v769_v34, -inf }
  0xf2   : > { %772 = vmax.xlane.f32.xlu0 %v771_v35 }
 0x17b   : > { %v773_v36 = vpop.xlane.xlu0 %772 }
 0x17c   : > { %v774_v37 = vsub.f32 %v769_v34, %v773_v36 }
 0x17e   : > { %v775_v38 = vmul.f32 1.442695, %v774_v37 }
 0x180   : > { %1505 = vpow2.f32 %v775_v38 }
 0x18d   : > { %v1506_v39 = vpop.eup %1505 }
 0x18e   : > { %v777_v40 = vsel %vm770_vm2, %v1506_v39, 0.0 }
 0x18f   : > { %778 = vadd.xlane.f32.xlu0 %v777_v40 }
 0x218   : > { %v779_v47 = vpop.xlane.xlu0 %778 }
 0x219   : > { %1507 = vrcp.f32 %v779_v47 }
 0x226   : > { %v1508_v48 = vpop.eup %1507 }
 0x227   : > { %v781_v49 = vmul.f32 %v1508_v48, %v1506_v39 }
 0x229   : > { %v783_v50 = vsel %vm770_vm2, %v781_v49, 0 }
 0x22a   : > { %v851_v51 = vand.u32 4294901760, %v783_v50 }
 0x22c   : > { %v852_v52 = vsub.f32 %v783_v50, %v851_v51  ;;  %1441 = vmatmul.mubr.f32.vlgmr.msra.gmra.mxu1 %v851_v51 }
 0x22d   : > { %1449 = vmatpush3.msra.mxu1 %v816_v42  ;;  %1450 = vmatprep.mubr.msk.f32.mxu1 %vm1550_vm0, %v1549_v0 }
 0x22e   : > { %v853_v53 = vand.u32 4294901760, %v852_v52  ;;  %1458 = vmatprep.subr.mxu1 %v1549_v0 }
 0x230   : > { %1451 = vmatmul.mubr.f32.vlgmr.msra.gmra.mxu1 %v853_v53  ;;  %v854_v54 = vsub.f32 %v852_v52, %v853_v53 }
 0x231   : > { %1459 = vmatpush3.msra.mxu1 %v816_v42  ;;  %1460 = vmatprep.mubr.msk.f32.mxu1 %vm1550_vm0, %v1549_v0 }
 0x232   : > { %v855_v55 = vand.u32 4294901760, %v854_v54 }
 0x234   : > { %1436 = vmatmul.mubr.f32.vlgmr.msra.gmra.mxu0 %v855_v55  ;;  %1461 = vmatmul.mubr.f32.vlgmr.msra.gmra.mxu1 %v851_v51 }
 0x235   : > { %1444 = vmatpush3.msra.mxu0 %v893_v43  ;;  %1445 = vmatprep.mubr.msk.f32.mxu0 %vm1550_vm0, %v1549_v0 }
 0x236   : > { %1453 = vmatprep.subr.mxu0 %v1549_v0 }
 0x238   : > { %1446 = vmatmul.mubr.f32.vlgmr.msra.gmra.mxu0 %v852_v52 }
 0x239   : > { %1454 = vmatpush3.msra.mxu0 %v894_v44  ;;  %1455 = vmatprep.mubr.msk.f32.mxu0 %vm1550_vm0, %v1549_v0 }
 0x23c   : > { %1456 = vmatmul.mubr.f32.vlgmr.msra.gmra.mxu0 %v851_v51 }
 0x2ec   : > { %v933_v56 = vpop.f32.mrf.mxu1 }
 0x2ee   : > { %v1442_v57 = vpop.f32.mrf.mxu1 }
 0x2f0   : > { %v1081_v58 = vpop.f32.mrf.mxu1 }
 0x2f2   : > { %v1452_v59 = vpop.f32.mrf.mxu1 }
 0x2f4   : > { %v857_v60 = vpop.f32.mrf.mxu0  ;;  %v1227_v61 = vpop.f32.mrf.mxu1 }
 0x2f5   : > { %v934_v1 = vadd.f32 %v933_v56, %v857_v60 }
 0x2f6   : > { %v1437_v62 = vpop.f32.mrf.mxu0  ;;  %v1462_v63 = vpop.f32.mrf.mxu1 }
 0x2f8   : > { %v1007_v2 = vpop.f32.mrf.mxu0 }
 0x2f9   : > { %v1008_v3 = vadd.f32 %v1007_v2, %v934_v1 }
 0x2fa   : > { %v1447_v4 = vpop.f32.mrf.mxu0 }
 0x2fb   : > { %v1082_v5 = vadd.f32 %v1081_v58, %v1008_v3 }
 0x2fc   : > { %v1155_v6 = vpop.f32.mrf.mxu0 }
 0x2fd   : > { %v1156_v7 = vadd.f32 %v1155_v6, %v1082_v5 }
 0x2fe   : > { %v1457_v0 = vpop.f32.mrf.mxu0 }
 0x2ff   : > { %v1228_v8 = vadd.f32 %v1227_v61, %v1156_v7 }
 0x301   : > { %1231 = vst.msk [vmem:[%s304_s13] sm:$0xff] %vm308_vm1, %v1228_v8 }
 0x302 PF: > { %s14_s19 = sadd.s32 1, %s1547_s19   ;;  %s1693_s15 = smov %s1539_s17 }
 0x303   : > { %p11_p7 = scmp.ge.s32.totalorder %s14_s19, 6   ;;  %s1694_s16 = smov %s1543_s18 }
 0x304   : > { %s1695_s17 = smov %s1698_s20  ;;  %s1696_s18 = smov %s1702_s21 }
 0x305   :  { %13 = sbr.rel (!%p11_p7) target bundleno = 3 (0x3), region = 75 }

// kernel: _lambda_.21
= control target key start
LH: loop header
LB: loop body
LE: loop exit
PB: predicated region body
PF: predicated region fallthrough
CT: control target
= control target key end

     0   :  { %vm18_vm0 = vcmask 261120   ;;  %v692_v38 = vmov 0.0   ;;  %s796_s1 = inlined_call_operand.vmem [shape: f32[32,32], index: 1, kind: input, shape index: {}]   ;;  %s797_s0 = inlined_call_operand.vmem [shape: f32[16,32], index: 0, kind: input, shape index: {}]   ;;  %s798_s2 = inlined_call_operand.vmem [shape: f32[1,32], index: 2, kind: input, shape index: {}]   ;;  %s799_s3 = inlined_call_operand.vmem [shape: f32[16,32], index: 3, kind: output, shape index: {}]  }
   0x1   :  { %v28_v0 = vld [vmem:[%s796_s1 + $0x18] sm:$0xff]  ;;  %v27_v1 = vld [vmem:[%s796_s1 + $0x10] sm:$0xff]  ;;  %v26_v2 = vld [vmem:[%s796_s1 + $0x8] sm:$0xff]  ;;  %20 = vst.msk [vmem:[#allocation2 + $0x8] sm:$0xff] %vm18_vm0, %v692_v38 }
   0x2   :  { %v722_v3 = vand.u32 4294901760, %v28_v0  ;;  %v724_v4 = vand.u32 4294901760, %v27_v1  ;;  %v726_v5 = vand.u32 4294901760, %v26_v2  ;;  %v25_v6 = vld [vmem:[%s796_s1] sm:$0xff]  ;;  %v24_v8 = vld [vmem:[%s797_s0 + $0x8] sm:$0xff]  ;;  %19 = vst.msk [vmem:[#allocation2] sm:$0xff] %vm18_vm0, %v692_v38 }
   0x3   :  { %v23_v7 = vld [vmem:[%s797_s0] sm:$0xff]  ;;  %v737_v9 = vand.u32 4294901760, %v25_v6  ;;  %v34_v11 = vsel %vm18_vm0, %v24_v8, 0 }
   0x4   :  { %v31_v10 = vsel %vm18_vm0, %v23_v7, 0  ;;  %625 = vmatprep.subr.mxu0 %v722_v3  ;;  %v151_v12 = vsub.f32 %v28_v0, %v722_v3  ;;  %v158_v14 = vsub.f32 %v27_v1, %v724_v4  ;;  %v746_v15 = vand.u32 4294901760, %v34_v11  ;;  %v588_v1 = vld [vmem:[%s798_s2] ss:$0 sm:$0xff] }
   0x5   :  { %v743_v13 = vand.u32 4294901760, %v31_v10  ;;  %626 = vmatpush3.msra.mxu0 %v722_v3  ;;  %v165_v16 = vsub.f32 %v26_v2, %v726_v5  ;;  %v172_v17 = vsub.f32 %v25_v6, %v737_v9 }
   0x6   :  { %627 = vmatprep.subr.mxu0 %v724_v4  ;;  %v152_v18 = vand.u32 4294901760, %v151_v12  ;;  %v159_v20 = vand.u32 4294901760, %v158_v14  ;;  %v116_v21 = vsub.f32 %v34_v11, %v746_v15 }
   0x7   :  { %v106_v19 = vsub.f32 %v31_v10, %v743_v13  ;;  %644 = vmatprep.mubr.f32.mxu1 %v743_v13  ;;  %628 = vmatpush3.msra.mxu0 %v724_v4  ;;  %v166_v22 = vand.u32 4294901760, %v165_v16  ;;  %v173_v23 = vand.u32 4294901760, %v172_v17 }
   0x8   :  { %629 = vmatprep.subr.mxu0 %v726_v5  ;;  %v153_v24 = vsub.f32 %v151_v12, %v152_v18  ;;  %v160_v26 = vsub.f32 %v158_v14, %v159_v20  ;;  %v117_v27 = vand.u32 4294901760, %v116_v21  ;;  %v22_v56 = vld [vmem:[#allocation2 + $0x8] sm:$0xff] }
   0x9   :  { %v107_v25 = vand.u32 4294901760, %v106_v19  ;;  %630 = vmatpush3.msra.mxu0 %v726_v5  ;;  %v167_v28 = vsub.f32 %v165_v16, %v166_v22  ;;  %v174_v29 = vsub.f32 %v172_v17, %v173_v23  ;;  %v21_v60 = vld [vmem:[#allocation2] sm:$0xff] }
   0xa   :  { %631 = vmatprep.subr.mxu0 %v737_v9  ;;  %v154_v30 = vand.u32 4294901760, %v153_v24  ;;  %v161_v32 = vand.u32 4294901760, %v160_v26  ;;  %v118_v33 = vsub.f32 %v116_v21, %v117_v27 }
   0xb   :  { %v108_v31 = vsub.f32 %v106_v19, %v107_v25  ;;  %632 = vmatpush3.msra.mxu0 %v737_v9  ;;  %v168_v36 = vand.u32 4294901760, %v167_v28  ;;  %v175_v37 = vand.u32 4294901760, %v174_v29 }
   0xc   :  { %636 = vmatprep.subr.mxu1 %v154_v30  ;;  %647 = vmatprep.subr.mxu0 %v151_v12  ;;  %v119_v35 = vand.u32 4294901760, %v118_v33 }
   0xd   :  { %v109_v34 = vand.u32 4294901760, %v108_v31  ;;  %637 = vmatpush3.msra.mxu1 %v154_v30 }
   0xe   :  { %638 = vmatprep.subr.mxu1 %v161_v32 }
   0xf   :  { %633 = vmatprep.mubr.f32.mxu0 %v109_v34  ;;  %639 = vmatpush3.msra.mxu1 %v161_v32 }
  0x10   :  { %634 = vmatmul.mubr.f32.vlgmr.msra.gmra.mxu0 %v119_v35  ;;  %640 = vmatprep.subr.mxu1 %v168_v36 }
  0x11   :  { %648 = vmatpush3.msra.mxu0 %v151_v12  ;;  %641 = vmatpush3.msra.mxu1 %v168_v36 }
  0x12   :  { %649 = vmatprep.subr.mxu0 %v158_v14  ;;  %642 = vmatprep.subr.mxu1 %v175_v37 }
  0x13   :  { %650 = vmatpush3.msra.mxu0 %v158_v14  ;;  %643 = vmatpush3.msra.mxu1 %v175_v37 }
  0x14   :  { %651 = vmatprep.subr.mxu0 %v165_v16  ;;  %645 = vmatmul.mubr.f32.vlgmr.msra.gmra.mxu1 %v746_v15 }
  0x15   :  { %652 = vmatpush3.msra.mxu0 %v165_v16  ;;  %658 = vmatprep.subr.mxu1 %v722_v3 }
  0x16   :  { %653 = vmatprep.subr.mxu0 %v172_v17  ;;  %655 = vmatprep.mubr.f32.mxu0 %v106_v19 }
  0x17   :  { %654 = vmatpush3.msra.mxu0 %v172_v17  ;;  %659 = vmatpush3.msra.mxu1 %v722_v3 }
  0x18   :  { %656 = vmatmul.mubr.f32.vlgmr.msra.gmra.mxu0 %v116_v21  ;;  %660 = vmatprep.subr.mxu1 %v724_v4 }
  0x19   :  { %669 = vmatprep.subr.mxu0 %v152_v18  ;;  %661 = vmatpush3.msra.mxu1 %v724_v4 }
  0x1a   :  { %670 = vmatpush3.msra.mxu0 %v152_v18  ;;  %662 = vmatprep.subr.mxu1 %v726_v5 }
  0x1b   :  { %671 = vmatprep.subr.mxu0 %v159_v20  ;;  %663 = vmatpush3.msra.mxu1 %v726_v5 }
  0x1c   :  { %672 = vmatpush3.msra.mxu0 %v159_v20  ;;  %664 = vmatprep.subr.mxu1 %v737_v9 }
  0x1d   :  { %673 = vmatprep.subr.mxu0 %v166_v22  ;;  %665 = vmatpush3.msra.mxu1 %v737_v9 }
  0x1e   :  { %666 = vmatprep.mubr.f32.mxu1 %v107_v25  ;;  %674 = vmatpush3.msra.mxu0 %v166_v22 }
  0x1f   :  { %667 = vmatmul.mubr.f32.vlgmr.msra.gmra.mxu1 %v117_v27  ;;  %675 = vmatprep.subr.mxu0 %v173_v23 }
  0x20   :  { %680 = vmatprep.subr.mxu1 %v722_v3  ;;  %676 = vmatpush3.msra.mxu0 %v173_v23 }
  0x21   :  { %677 = vmatprep.mubr.f32.mxu0 %v743_v13  ;;  %681 = vmatpush3.msra.mxu1 %v722_v3 }
  0x22   :  { %678 = vmatmul.mubr.f32.vlgmr.msra.gmra.mxu0 %v746_v15  ;;  %682 = vmatprep.subr.mxu1 %v724_v4 }
  0x23   :  { %688 = vmatprep.mubr.f32.mxu1 %v743_v13  ;;  %683 = vmatpush3.msra.mxu1 %v724_v4 }
  0x24   :  { %684 = vmatprep.subr.mxu1 %v726_v5 }
  0x25   :  { %685 = vmatpush3.msra.mxu1 %v726_v5 }
  0x26   :  { %686 = vmatprep.subr.mxu1 %v737_v9 }
  0x27   :  { %687 = vmatpush3.msra.mxu1 %v737_v9 }
  0x28   :  { %689 = vmatmul.mubr.f32.vlgmr.msra.gmra.mxu1 %v746_v15 }
  0xd0   :  { %v635_v39 = vpop.f32.mrf.mxu0 }
  0xd2   :  { %v111_v40 = vpop.f32.mrf.mxu0 }
  0xd4   :  { %v646_v41 = vpop.f32.mrf.mxu1 }
  0xd5   :  { %v219_v44 = vadd.f32 %v646_v41, %v635_v39 }
  0xd6   :  { %v212_v42 = vpop.f32.mrf.mxu1 }
  0xd7   :  { %v213_v46 = vadd.f32 %v212_v42, %v111_v40 }
  0xd8   :  { %v657_v43 = vpop.f32.mrf.mxu0 }
  0xd9   :  { %v306_v48 = vadd.f32 %v657_v43, %v219_v44 }
  0xda   :  { %v298_v47 = vpop.f32.mrf.mxu0 }
  0xdb   :  { %v299_v51 = vadd.f32 %v298_v47, %v213_v46 }
  0xdf   :  { %v668_v45 = vpop.f32.mrf.mxu1 }
  0xe0   :  { %v391_v52 = vadd.f32 %v668_v45, %v306_v48 }
  0xe1   :  { %v382_v49 = vpop.f32.mrf.mxu1 }
  0xe2   :  { %v679_v50 = vpop.f32.mrf.mxu0  ;;  %v383_v53 = vadd.f32 %v382_v49, %v299_v51 }
  0xe3   :  { %v480_v55 = vadd.f32 %v679_v50, %v391_v52 }
  0xe4   :  { %v473_v54 = vpop.f32.mrf.mxu0 }
  0xe5   :  { %v474_v58 = vadd.f32 %v473_v54, %v383_v53 }
  0xe8   :  { %v690_v57 = vpop.f32.mrf.mxu1 }
  0xe9   :  { %v561_v59 = vadd.f32 %v690_v57, %v480_v55 }
  0xea   :  { %v554_v61 = vpop.f32.mrf.mxu1 }
  0xeb   :  { %v565_v62 = vadd.f32 %v561_v59, %v22_v56  ;;  %v555_v63 = vadd.f32 %v554_v61, %v474_v58 }
  0xed   :  { %567 = vst.msk [vmem:[#allocation2 + $0x8] sm:$0xff] %vm18_vm0, %v565_v62  ;;  %v564_v0 = vadd.f32 %v555_v63, %v21_v60 }
  0xef   :  { %566 = vst.msk [vmem:[#allocation2] sm:$0xff] %vm18_vm0, %v564_v0 }
  0xf4   :  { %v572_v2 = vld [vmem:[#allocation2 + $0x8] sm:$0xff] }
  0xf5   :  { %v581_v3 = vadd.f32 %v588_v1, %v572_v2 }
  0xf6   :  { %v571_v4 = vld [vmem:[#allocation2] sm:$0xff] }
  0xf7   :  { %583 = vst.msk [vmem:[%s799_s3 + $0x8] sm:$0xff] %vm18_vm0, %v581_v3  ;;  %v580_v5 = vadd.f32 %v588_v1, %v571_v4 }
  0xf9   :  { %582 = vst.msk [vmem:[%s799_s3] sm:$0xff] %vm18_vm0, %v580_v5 }

// kernel: _lambda_.23
= control target key start
LH: loop header
LB: loop body
LE: loop exit
PB: predicated region body
PF: predicated region fallthrough
CT: control target
= control target key end

     0   :  { %vm28_vm0 = vcmask 261120   ;;  %s807_s1 = inlined_call_operand.vmem [shape: f32[32,128], index: 1, kind: input, shape index: {}]   ;;  %s808_s0 = inlined_call_operand.vmem [shape: f32[16,32], index: 0, kind: input, shape index: {}]   ;;  %s809_s2 = inlined_call_operand.vmem [shape: f32[1,128], index: 2, kind: input, shape index: {}]   ;;  %s810_s3 = inlined_call_operand.vmem [shape: f32[16,128], index: 3, kind: output, shape index: {}]  }
   0x1   :  { %v27_v0 = vld [vmem:[%s807_s1 + $0x18] sm:$0xff]  ;;  %v26_v1 = vld [vmem:[%s807_s1 + $0x10] sm:$0xff]  ;;  %v25_v2 = vld [vmem:[%s807_s1 + $0x8] sm:$0xff] }
   0x2   :  { %v741_v3 = vand.u32 4294901760, %v27_v0  ;;  %v743_v4 = vand.u32 4294901760, %v26_v1  ;;  %v745_v5 = vand.u32 4294901760, %v25_v2  ;;  %v24_v6 = vld [vmem:[%s807_s1] sm:$0xff]  ;;  %v23_v8 = vld [vmem:[%s808_s0 + $0x8] sm:$0xff] }
   0x3   :  { %v22_v7 = vld [vmem:[%s808_s0] sm:$0xff]  ;;  %v756_v9 = vand.u32 4294901760, %v24_v6  ;;  %v33_v11 = vsel %vm28_vm0, %v23_v8, 0 }
   0x4   :  { %v30_v10 = vsel %vm28_vm0, %v22_v7, 0  ;;  %642 = vmatprep.subr.mxu0 %v741_v3  ;;  %v150_v12 = vsub.f32 %v27_v0, %v741_v3  ;;  %v762_v14 = vand.u32 4294901760, %v33_v11  ;;  %v157_v15 = vsub.f32 %v26_v1, %v743_v4  ;;  %v605_v56 = vld [vmem:[%s809_s2] ss:$0 sm:$0xff] }
   0x5   :  { %v760_v13 = vand.u32 4294901760, %v30_v10  ;;  %643 = vmatpush3.msra.mxu0 %v741_v3  ;;  %v164_v16 = vsub.f32 %v25_v2, %v745_v5  ;;  %v171_v17 = vsub.f32 %v24_v6, %v756_v9 }
   0x6   :  { %644 = vmatprep.subr.mxu0 %v743_v4  ;;  %v151_v18 = vand.u32 4294901760, %v150_v12  ;;  %v158_v20 = vand.u32 4294901760, %v157_v15  ;;  %v115_v21 = vsub.f32 %v33_v11, %v762_v14 }
   0x7   :  { %v105_v19 = vsub.f32 %v30_v10, %v760_v13  ;;  %661 = vmatprep.mubr.f32.mxu1 %v760_v13  ;;  %645 = vmatpush3.msra.mxu0 %v743_v4  ;;  %v165_v22 = vand.u32 4294901760, %v164_v16  ;;  %v172_v23 = vand.u32 4294901760, %v171_v17 }
   0x8   :  { %646 = vmatprep.subr.mxu0 %v745_v5  ;;  %v152_v24 = vsub.f32 %v150_v12, %v151_v18  ;;  %v159_v26 = vsub.f32 %v157_v15, %v158_v20  ;;  %v116_v27 = vand.u32 4294901760, %v115_v21 }
   0x9   :  { %v106_v25 = vand.u32 4294901760, %v105_v19  ;;  %647 = vmatpush3.msra.mxu0 %v745_v5  ;;  %v166_v28 = vsub.f32 %v164_v16, %v165_v22  ;;  %v173_v29 = vsub.f32 %v171_v17, %v172_v23 }
   0xa   :  { %648 = vmatprep.subr.mxu0 %v756_v9  ;;  %v153_v30 = vand.u32 4294901760, %v152_v24  ;;  %v160_v32 = vand.u32 4294901760, %v159_v26  ;;  %v117_v33 = vsub.f32 %v115_v21, %v116_v27 }
   0xb   :  { %v107_v31 = vsub.f32 %v105_v19, %v106_v25  ;;  %649 = vmatpush3.msra.mxu0 %v756_v9  ;;  %v167_v36 = vand.u32 4294901760, %v166_v28  ;;  %v174_v37 = vand.u32 4294901760, %v173_v29 }
   0xc   :  { %653 = vmatprep.subr.mxu1 %v153_v30  ;;  %664 = vmatprep.subr.mxu0 %v150_v12  ;;  %v118_v35 = vand.u32 4294901760, %v117_v33 }
   0xd   :  { %v108_v34 = vand.u32 4294901760, %v107_v31  ;;  %654 = vmatpush3.msra.mxu1 %v153_v30 }
   0xe   :  { %655 = vmatprep.subr.mxu1 %v160_v32 }
   0xf   :  { %650 = vmatprep.mubr.f32.mxu0 %v108_v34  ;;  %656 = vmatpush3.msra.mxu1 %v160_v32 }
  0x10   :  { %651 = vmatmul.mubr.f32.vlgmr.msra.gmra.mxu0 %v118_v35  ;;  %657 = vmatprep.subr.mxu1 %v167_v36 }
  0x11   :  { %665 = vmatpush3.msra.mxu0 %v150_v12  ;;  %658 = vmatpush3.msra.mxu1 %v167_v36 }
  0x12   :  { %666 = vmatprep.subr.mxu0 %v157_v15  ;;  %659 = vmatprep.subr.mxu1 %v174_v37 }
  0x13   :  { %667 = vmatpush3.msra.mxu0 %v157_v15  ;;  %660 = vmatpush3.msra.mxu1 %v174_v37 }
  0x14   :  { %668 = vmatprep.subr.mxu0 %v164_v16  ;;  %662 = vmatmul.mubr.f32.vlgmr.msra.gmra.mxu1 %v762_v14 }
  0x15   :  { %669 = vmatpush3.msra.mxu0 %v164_v16  ;;  %675 = vmatprep.subr.mxu1 %v741_v3 }
  0x16   :  { %670 = vmatprep.subr.mxu0 %v171_v17  ;;  %672 = vmatprep.mubr.f32.mxu0 %v105_v19 }
  0x17   :  { %671 = vmatpush3.msra.mxu0 %v171_v17  ;;  %676 = vmatpush3.msra.mxu1 %v741_v3 }
  0x18   :  { %673 = vmatmul.mubr.f32.vlgmr.msra.gmra.mxu0 %v115_v21  ;;  %677 = vmatprep.subr.mxu1 %v743_v4 }
  0x19   :  { %686 = vmatprep.subr.mxu0 %v151_v18  ;;  %678 = vmatpush3.msra.mxu1 %v743_v4 }
  0x1a   :  { %687 = vmatpush3.msra.mxu0 %v151_v18  ;;  %679 = vmatprep.subr.mxu1 %v745_v5 }
  0x1b   :  { %688 = vmatprep.subr.mxu0 %v158_v20  ;;  %680 = vmatpush3.msra.mxu1 %v745_v5 }
  0x1c   :  { %689 = vmatpush3.msra.mxu0 %v158_v20  ;;  %681 = vmatprep.subr.mxu1 %v756_v9 }
  0x1d   :  { %690 = vmatprep.subr.mxu0 %v165_v22  ;;  %682 = vmatpush3.msra.mxu1 %v756_v9 }
  0x1e   :  { %683 = vmatprep.mubr.f32.mxu1 %v106_v25  ;;  %691 = vmatpush3.msra.mxu0 %v165_v22 }
  0x1f   :  { %684 = vmatmul.mubr.f32.vlgmr.msra.gmra.mxu1 %v116_v27  ;;  %692 = vmatprep.subr.mxu0 %v172_v23 }
  0x20   :  { %697 = vmatprep.subr.mxu1 %v741_v3  ;;  %693 = vmatpush3.msra.mxu0 %v172_v23 }
  0x21   :  { %694 = vmatprep.mubr.f32.mxu0 %v760_v13  ;;  %698 = vmatpush3.msra.mxu1 %v741_v3 }
  0x22   :  { %695 = vmatmul.mubr.f32.vlgmr.msra.gmra.mxu0 %v762_v14  ;;  %699 = vmatprep.subr.mxu1 %v743_v4 }
  0x23   :  { %705 = vmatprep.mubr.f32.mxu1 %v760_v13  ;;  %700 = vmatpush3.msra.mxu1 %v743_v4 }
  0x24   :  { %701 = vmatprep.subr.mxu1 %v745_v5 }
  0x25   :  { %702 = vmatpush3.msra.mxu1 %v745_v5 }
  0x26   :  { %703 = vmatprep.subr.mxu1 %v756_v9 }
  0x27   :  { %704 = vmatpush3.msra.mxu1 %v756_v9 }
  0x28   :  { %706 = vmatmul.mubr.f32.vlgmr.msra.gmra.mxu1 %v762_v14 }
  0xd0   :  { %v652_v38 = vpop.f32.mrf.mxu0 }
  0xd2   :  { %v110_v39 = vpop.f32.mrf.mxu0 }
  0xd4   :  { %v663_v40 = vpop.f32.mrf.mxu1 }
  0xd5   :  { %v218_v43 = vadd.f32 %v663_v40, %v652_v38 }
  0xd6   :  { %v211_v41 = vpop.f32.mrf.mxu1 }
  0xd7   :  { %v212_v45 = vadd.f32 %v211_v41, %v110_v39 }
  0xd8   :  { %v674_v42 = vpop.f32.mrf.mxu0 }
  0xd9   :  { %v305_v47 = vadd.f32 %v674_v42, %v218_v43 }
  0xda   :  { %v297_v46 = vpop.f32.mrf.mxu0 }
  0xdb   :  { %v298_v50 = vadd.f32 %v297_v46, %v212_v45 }
  0xdf   :  { %v685_v44 = vpop.f32.mrf.mxu1 }
  0xe0   :  { %v390_v51 = vadd.f32 %v685_v44, %v305_v47 }
  0xe1   :  { %v381_v48 = vpop.f32.mrf.mxu1 }
  0xe2   :  { %v696_v49 = vpop.f32.mrf.mxu0  ;;  %v382_v52 = vadd.f32 %v381_v48, %v298_v50 }
  0xe3   :  { %v479_v54 = vadd.f32 %v696_v49, %v390_v51 }
  0xe4   :  { %v472_v53 = vpop.f32.mrf.mxu0 }
  0xe5   :  { %v473_v57 = vadd.f32 %v472_v53, %v382_v52 }
  0xe8   :  { %v707_v55 = vpop.f32.mrf.mxu1 }
  0xe9   :  { %v560_v58 = vadd.f32 %v707_v55, %v479_v54 }
  0xea   :  { %v553_v59 = vpop.f32.mrf.mxu1 }
  0xeb   :  { %v580_v60 = vadd.f32 %v605_v56, %v560_v58  ;;  %v554_v61 = vadd.f32 %v553_v59, %v473_v57 }
  0xed   :  { %v584_v62 = vmul.f32 0.044715, %v580_v60  ;;  %v579_v63 = vadd.f32 %v605_v56, %v554_v61  ;;  %v582_v10 = vmul.f32 0.5, %v580_v60 }
  0xef   :  { %v586_v0 = vmul.f32 %v584_v62, %v580_v60  ;;  %v583_v1 = vmul.f32 0.044715, %v579_v63  ;;  %v581_v14 = vmul.f32 0.5, %v579_v63 }
  0xf1   :  { %v588_v2 = vmul.f32 %v586_v0, %v580_v60  ;;  %v585_v3 = vmul.f32 %v583_v1, %v579_v63 }
  0xf3   :  { %v590_v4 = vadd.f32 %v588_v2, %v580_v60  ;;  %v587_v5 = vmul.f32 %v585_v3, %v579_v63 }
  0xf5   :  { %v592_v6 = vmul.f32 0.7978846, %v590_v4  ;;  %v589_v7 = vadd.f32 %v587_v5, %v579_v63 }
  0xf7   :  { %708 = vtanh.f32 %v592_v6  ;;  %v591_v8 = vmul.f32 0.7978846, %v589_v7 }
  0xf9   :  { %710 = vtanh.f32 %v591_v8 }
 0x104   :  { %v709_v9 = vpop.eup %708 }
 0x105   :  { %v596_v11 = vadd.f32 1.0, %v709_v9 }
 0x106   :  { %v711_v12 = vpop.eup %710 }
 0x107   :  { %v598_v13 = vmul.f32 %v596_v11, %v582_v10  ;;  %v595_v15 = vadd.f32 1.0, %v711_v12 }
 0x109   :  { %600 = vst [vmem:[%s810_s3 + $0x8] sm:$0xff] %v598_v13  ;;  %v597_v16 = vmul.f32 %v595_v15, %v581_v14 }
 0x10b   :  { %599 = vst [vmem:[%s810_s3] sm:$0xff] %v597_v16 }

// kernel: _lambda_.24
= control target key start
LH: loop header
LB: loop body
LE: loop exit
PB: predicated region body
PF: predicated region fallthrough
CT: control target
= control target key end

     0   :  { %vm18_vm0 = vcmask 261120   ;;  %s1510_s1 = inlined_call_operand.vmem [shape: f32[128,32], index: 1, kind: input, shape index: {}]   ;;  %s1511_s0 = inlined_call_operand.vmem [shape: f32[16,128], index: 0, kind: input, shape index: {}]   ;;  %s1512_s2 = inlined_call_operand.vmem [shape: f32[1,32], index: 2, kind: input, shape index: {}]   ;;  %s1513_s3 = inlined_call_operand.vmem [shape: f32[16,32], index: 3, kind: output, shape index: {}]  }
   0x1   :  { %v40_v0 = vld [vmem:[%s1510_s1 + $0x78] sm:$0xff]  ;;  %v39_v1 = vld [vmem:[%s1510_s1 + $0x70] sm:$0xff]  ;;  %v38_v2 = vld [vmem:[%s1510_s1 + $0x68] sm:$0xff] }
   0x2   :  { %v1100_v3 = vand.u32 4294901760, %v40_v0  ;;  %v1102_v4 = vand.u32 4294901760, %v39_v1  ;;  %v1104_v5 = vand.u32 4294901760, %v38_v2  ;;  %v37_v6 = vld [vmem:[%s1510_s1 + $0x60] sm:$0xff]  ;;  %v36_v7 = vld [vmem:[%s1510_s1 + $0x58] sm:$0xff]  ;;  %v35_v8 = vld [vmem:[%s1510_s1 + $0x50] sm:$0xff] }
   0x3   :  { %v1115_v9 = vand.u32 4294901760, %v37_v6  ;;  %v1117_v10 = vand.u32 4294901760, %v36_v7  ;;  %v1119_v11 = vand.u32 4294901760, %v35_v8  ;;  %v34_v12 = vld [vmem:[%s1510_s1 + $0x48] sm:$0xff]  ;;  %v33_v13 = vld [vmem:[%s1510_s1 + $0x40] sm:$0xff]  ;;  %v32_v18 = vld [vmem:[%s1510_s1 + $0x38] sm:$0xff] }
   0x4   :  { %859 = vmatprep.subr.mxu0 %v1100_v3  ;;  %v1129_v14 = vsub.f32 %v40_v0, %v1100_v3  ;;  %v1132_v15 = vsub.f32 %v39_v1, %v1102_v4  ;;  %v1134_v16 = vand.u32 4294901760, %v34_v12  ;;  %v1137_v17 = vsub.f32 %v38_v2, %v1104_v5  ;;  %v31_v25 = vld [vmem:[%s1510_s1 + $0x30] sm:$0xff]  ;;  %v30_v35 = vld [vmem:[%s1510_s1 + $0x28] sm:$0xff]  ;;  %v29_v40 = vld [vmem:[%s1510_s1 + $0x20] sm:$0xff] }
   0x5   :  { %860 = vmatpush3.msra.mxu0 %v1100_v3  ;;  %v1144_v19 = vsub.f32 %v37_v6, %v1115_v9  ;;  %v1147_v20 = vsub.f32 %v36_v7, %v1117_v10  ;;  %v1159_v24 = vand.u32 4294901760, %v33_v13  ;;  %v1168_v27 = vand.u32 4294901760, %v32_v18  ;;  %v28_v48 = vld [vmem:[%s1510_s1 + $0x18] sm:$0xff]  ;;  %v23_v49 = vld [vmem:[%s1511_s0] sm:$0xff]  ;;  %v24_v54 = vld [vmem:[%s1511_s0 + $0x8] sm:$0xff] }
   0x6   :  { %861 = vmatprep.subr.mxu0 %v1102_v4  ;;  %v1151_v21 = vand.u32 4294901760, %v1129_v14  ;;  %v1154_v22 = vand.u32 4294901760, %v1132_v15  ;;  %v1157_v23 = vand.u32 4294901760, %v1137_v17  ;;  %v1174_v29 = vsub.f32 %v35_v8, %v1119_v11  ;;  %v27_v59 = vld [vmem:[%s1510_s1 + $0x10] sm:$0xff]  ;;  %v26_v2 = vld [vmem:[%s1510_s1 + $0x8] sm:$0xff] }
   0x7   :  { %862 = vmatpush3.msra.mxu0 %v1102_v4  ;;  %v1166_v26 = vand.u32 4294901760, %v1144_v19  ;;  %v1171_v28 = vand.u32 4294901760, %v1147_v20  ;;  %v1184_v33 = vsub.f32 %v34_v12, %v1134_v16  ;;  %v1187_v34 = vand.u32 4294901760, %v31_v25 }
   0x8   :  { %863 = vmatprep.subr.mxu0 %v1104_v5  ;;  %v146_v30 = vsub.f32 %v1129_v14, %v1151_v21  ;;  %v153_v31 = vsub.f32 %v1132_v15, %v1154_v22  ;;  %v160_v32 = vsub.f32 %v1137_v17, %v1157_v23  ;;  %v1196_v39 = vand.u32 4294901760, %v1174_v29 }
   0x9   :  { %864 = vmatpush3.msra.mxu0 %v1104_v5  ;;  %v167_v38 = vsub.f32 %v1144_v19, %v1166_v26  ;;  %v174_v41 = vsub.f32 %v1147_v20, %v1171_v28  ;;  %v1205_v42 = vand.u32 4294901760, %v1184_v33  ;;  %v1208_v43 = vsub.f32 %v33_v13, %v1159_v24 }
   0xa   :  { %865 = vmatprep.subr.mxu0 %v1115_v9  ;;  %v147_v36 = vand.u32 4294901760, %v146_v30  ;;  %v154_v37 = vand.u32 4294901760, %v153_v31  ;;  %v161_v44 = vand.u32 4294901760, %v160_v32  ;;  %v1211_v45 = vand.u32 4294901760, %v30_v35 }
   0xb   :  { %866 = vmatpush3.msra.mxu0 %v1115_v9  ;;  %v1214_v46 = vsub.f32 %v32_v18, %v1168_v27  ;;  %v1217_v47 = vand.u32 4294901760, %v29_v40  ;;  %v168_v50 = vand.u32 4294901760, %v167_v38  ;;  %v181_v51 = vsub.f32 %v1174_v29, %v1196_v39  ;;  %v25_v18 = vld [vmem:[%s1510_s1] sm:$0xff] }
   0xc   :  { %867 = vmatprep.subr.mxu0 %v1117_v10  ;;  %894 = vmatprep.subr.mxu1 %v147_v36  ;;  %v1229_v52 = vand.u32 4294901760, %v1208_v43  ;;  %v1232_v53 = vsub.f32 %v31_v25, %v1187_v34  ;;  %v175_v55 = vand.u32 4294901760, %v174_v41  ;;  %v188_v56 = vsub.f32 %v1184_v33, %v1205_v42 }
   0xd   :  { %868 = vmatpush3.msra.mxu0 %v1117_v10  ;;  %895 = vmatpush3.msra.mxu1 %v147_v36  ;;  %v1241_v57 = vand.u32 4294901760, %v28_v48  ;;  %v1244_v58 = vand.u32 4294901760, %v1214_v46  ;;  %v1250_v60 = vsub.f32 %v30_v35, %v1211_v45  ;;  %v1252_v61 = vand.u32 4294901760, %v23_v49 }
   0xe   :  { %869 = vmatprep.subr.mxu0 %v1119_v11  ;;  %896 = vmatprep.subr.mxu1 %v154_v37  ;;  %v1255_v62 = vand.u32 4294901760, %v24_v54  ;;  %v182_v63 = vand.u32 4294901760, %v181_v51  ;;  %v195_v0 = vsub.f32 %v1208_v43, %v1229_v52  ;;  %v1261_v1 = vand.u32 4294901760, %v1232_v53 }
   0xf   :  { %870 = vmatpush3.msra.mxu0 %v1119_v11  ;;  %897 = vmatpush3.msra.mxu1 %v154_v37  ;;  %v1267_v6 = vsub.f32 %v29_v40, %v1217_v47  ;;  %v189_v7 = vand.u32 4294901760, %v188_v56  ;;  %v1270_v8 = vand.u32 4294901760, %v27_v59  ;;  %v202_v12 = vsub.f32 %v1214_v46, %v1244_v58 }
  0x10   :  { %871 = vmatprep.subr.mxu0 %v1134_v16  ;;  %898 = vmatprep.subr.mxu1 %v161_v44  ;;  %v1276_v13 = vand.u32 4294901760, %v1250_v60  ;;  %v1282_v25 = vsub.f32 %v23_v49, %v1252_v61  ;;  %v1285_v30 = vsub.f32 %v28_v48, %v1241_v57  ;;  %v1288_v31 = vand.u32 4294901760, %v26_v2 }
  0x11   :  { %872 = vmatpush3.msra.mxu0 %v1134_v16  ;;  %899 = vmatpush3.msra.mxu1 %v161_v44  ;;  %v1291_v32 = vsub.f32 %v24_v54, %v1255_v62  ;;  %v196_v35 = vand.u32 4294901760, %v195_v0  ;;  %v209_v36 = vsub.f32 %v1232_v53, %v1261_v1  ;;  %v1297_v37 = vand.u32 4294901760, %v1267_v6 }
  0x12   :  { %873 = vmatprep.subr.mxu0 %v1159_v24  ;;  %900 = vmatprep.subr.mxu1 %v168_v50  ;;  %v1300_v38 = vand.u32 4294901760, %v25_v18  ;;  %v1303_v40 = vsub.f32 %v27_v59, %v1270_v8  ;;  %v203_v41 = vand.u32 4294901760, %v202_v12  ;;  %v216_v44 = vsub.f32 %v1250_v60, %v1276_v13 }
  0x13   :  { %874 = vmatpush3.msra.mxu0 %v1159_v24  ;;  %901 = vmatpush3.msra.mxu1 %v168_v50  ;;  %v1515_v48 = vand.u32 4294901760, %v1282_v25  ;;  %v1310_v49 = vand.u32 4294901760, %v1285_v30  ;;  %v1514_v50 = vand.u32 4294901760, %v1291_v32  ;;  %v1315_v51 = vsub.f32 %v26_v2, %v1288_v31 }
  0x14   :  { %875 = vmatprep.subr.mxu0 %v1168_v27  ;;  %902 = vmatprep.subr.mxu1 %v175_v55  ;;  %v210_v54 = vand.u32 4294901760, %v209_v36  ;;  %v1322_v56 = vand.u32 4294901760, %v1303_v40  ;;  %v1325_v59 = vsub.f32 %v25_v18, %v1300_v38 }
  0x15   :  { %876 = vmatpush3.msra.mxu0 %v1168_v27  ;;  %903 = vmatpush3.msra.mxu1 %v175_v55  ;;  %v223_v55 = vsub.f32 %v1267_v6, %v1297_v37  ;;  %v125_v0 = vsub.f32 %v1282_v25, %v1515_v48  ;;  %v230_v2 = vsub.f32 %v1285_v30, %v1310_v49  ;;  %v1338_v12 = vand.u32 4294901760, %v1315_v51 }
  0x16   :  { %877 = vmatprep.subr.mxu0 %v1187_v34  ;;  %904 = vmatprep.subr.mxu1 %v182_v63  ;;  %v1345_v36 = vand.u32 4294901760, %v1325_v59 }
  0x17   :  { %878 = vmatpush3.msra.mxu0 %v1187_v34  ;;  %905 = vmatpush3.msra.mxu1 %v182_v63  ;;  %v217_v63 = vand.u32 4294901760, %v216_v44  ;;  %v224_v18 = vand.u32 4294901760, %v223_v55  ;;  %v231_v44 = vand.u32 4294901760, %v230_v2  ;;  %v244_v55 = vsub.f32 %v1315_v51, %v1338_v12 }
  0x18   :  { %879 = vmatprep.subr.mxu0 %v1211_v45  ;;  %906 = vmatprep.subr.mxu1 %v189_v7  ;;  %v251_v48 = vsub.f32 %v1325_v59, %v1345_v36 }
  0x19   :  { %880 = vmatpush3.msra.mxu0 %v1211_v45  ;;  %907 = vmatpush3.msra.mxu1 %v189_v7  ;;  %v135_v7 = vsub.f32 %v1291_v32, %v1514_v50 }
  0x1a   :  { %881 = vmatprep.subr.mxu0 %v1217_v47  ;;  %908 = vmatprep.subr.mxu1 %v196_v35 }
  0x1b   :  { %882 = vmatpush3.msra.mxu0 %v1217_v47  ;;  %909 = vmatpush3.msra.mxu1 %v196_v35  ;;  %v237_v35 = vsub.f32 %v1303_v40, %v1322_v56  ;;  %v136_v50 = vand.u32 4294901760, %v135_v7 }
  0x1c   :  { %883 = vmatprep.subr.mxu0 %v1241_v57  ;;  %910 = vmatprep.subr.mxu1 %v203_v41 }
  0x1d   :  { %884 = vmatpush3.msra.mxu0 %v1241_v57  ;;  %911 = vmatpush3.msra.mxu1 %v203_v41  ;;  %v126_v41 = vand.u32 4294901760, %v125_v0  ;;  %v252_v0 = vand.u32 4294901760, %v251_v48 }
  0x1e   :  { %885 = vmatprep.subr.mxu0 %v1270_v8  ;;  %912 = vmatprep.subr.mxu1 %v210_v54 }
  0x1f   :  { %886 = vmatpush3.msra.mxu0 %v1270_v8  ;;  %913 = vmatpush3.msra.mxu1 %v210_v54  ;;  %v238_v54 = vand.u32 4294901760, %v237_v35 }
  0x20   :  { %887 = vmatprep.subr.mxu0 %v1288_v31  ;;  %914 = vmatprep.subr.mxu1 %v217_v63 }
  0x21   :  { %888 = vmatpush3.msra.mxu0 %v1288_v31  ;;  %915 = vmatpush3.msra.mxu1 %v217_v63  ;;  %v245_v63 = vand.u32 4294901760, %v244_v55 }
  0x22   :  { %889 = vmatprep.subr.mxu0 %v1300_v38  ;;  %916 = vmatprep.subr.mxu1 %v224_v18 }
  0x23   :  { %890 = vmatpush3.msra.mxu0 %v1300_v38  ;;  %917 = vmatpush3.msra.mxu1 %v224_v18 }
  0x24   :  { %891 = vmatprep.mubr.f32.mxu0 %v126_v41  ;;  %918 = vmatprep.subr.mxu1 %v231_v44 }
  0x25   :  { %929 = vmatprep.subr.mxu0 %v1129_v14  ;;  %892 = vmatmul.mubr.f32.vlgmr.msra.gmra.mxu0 %v136_v50 }
  0x26   :  { %919 = vmatpush3.msra.mxu1 %v231_v44  ;;  %930 = vmatpush3.msra.mxu0 %v1129_v14  ;;  %v1516_v14 = vand.u32 4294901760, %v1282_v25 }
  0x27   :  { %920 = vmatprep.subr.mxu1 %v238_v54  ;;  %931 = vmatprep.subr.mxu0 %v1132_v15 }
  0x28   :  { %921 = vmatpush3.msra.mxu1 %v238_v54  ;;  %932 = vmatpush3.msra.mxu0 %v1132_v15  ;;  %v1517_v15 = vand.u32 4294901760, %v1291_v32 }
  0x29   :  { %922 = vmatprep.subr.mxu1 %v245_v63  ;;  %933 = vmatprep.subr.mxu0 %v1137_v17 }
  0x2a   :  { %923 = vmatpush3.msra.mxu1 %v245_v63  ;;  %934 = vmatpush3.msra.mxu0 %v1137_v17 }
  0x2b   :  { %924 = vmatprep.subr.mxu1 %v252_v0  ;;  %935 = vmatprep.subr.mxu0 %v1144_v19 }
  0x2c   :  { %925 = vmatpush3.msra.mxu1 %v252_v0  ;;  %926 = vmatprep.mubr.f32.mxu1 %v1252_v61 }
  0x2d   :  { %936 = vmatpush3.msra.mxu0 %v1144_v19  ;;  %927 = vmatmul.mubr.f32.vlgmr.msra.gmra.mxu1 %v1255_v62 }
  0x2e   :  { %937 = vmatprep.subr.mxu0 %v1147_v20  ;;  %964 = vmatprep.subr.mxu1 %v1100_v3 }
  0x2f   :  { %938 = vmatpush3.msra.mxu0 %v1147_v20  ;;  %965 = vmatpush3.msra.mxu1 %v1100_v3 }
  0x30   :  { %939 = vmatprep.subr.mxu0 %v1174_v29  ;;  %966 = vmatprep.subr.mxu1 %v1102_v4 }
  0x31   :  { %940 = vmatpush3.msra.mxu0 %v1174_v29  ;;  %967 = vmatpush3.msra.mxu1 %v1102_v4 }
  0x32   :  { %941 = vmatprep.subr.mxu0 %v1184_v33  ;;  %968 = vmatprep.subr.mxu1 %v1104_v5 }
  0x33   :  { %942 = vmatpush3.msra.mxu0 %v1184_v33  ;;  %969 = vmatpush3.msra.mxu1 %v1104_v5 }
  0x34   :  { %943 = vmatprep.subr.mxu0 %v1208_v43  ;;  %970 = vmatprep.subr.mxu1 %v1115_v9 }
  0x35   :  { %944 = vmatpush3.msra.mxu0 %v1208_v43  ;;  %971 = vmatpush3.msra.mxu1 %v1115_v9 }
  0x36   :  { %945 = vmatprep.subr.mxu0 %v1214_v46  ;;  %972 = vmatprep.subr.mxu1 %v1117_v10 }
  0x37   :  { %946 = vmatpush3.msra.mxu0 %v1214_v46  ;;  %973 = vmatpush3.msra.mxu1 %v1117_v10 }
  0x38   :  { %947 = vmatprep.subr.mxu0 %v1232_v53  ;;  %974 = vmatprep.subr.mxu1 %v1119_v11 }
  0x39   :  { %948 = vmatpush3.msra.mxu0 %v1232_v53  ;;  %975 = vmatpush3.msra.mxu1 %v1119_v11  ;;  %v750_v53 = vld [vmem:[%s1512_s2] ss:$0 sm:$0xff] }
  0x3a   :  { %949 = vmatprep.subr.mxu0 %v1250_v60  ;;  %976 = vmatprep.subr.mxu1 %v1134_v16 }
  0x3b   :  { %950 = vmatpush3.msra.mxu0 %v1250_v60  ;;  %977 = vmatpush3.msra.mxu1 %v1134_v16 }
  0x3c   :  { %951 = vmatprep.subr.mxu0 %v1267_v6  ;;  %978 = vmatprep.subr.mxu1 %v1159_v24 }
  0x3d   :  { %952 = vmatpush3.msra.mxu0 %v1267_v6  ;;  %979 = vmatpush3.msra.mxu1 %v1159_v24 }
  0x3e   :  { %953 = vmatprep.subr.mxu0 %v1285_v30  ;;  %980 = vmatprep.subr.mxu1 %v1168_v27 }
  0x3f   :  { %954 = vmatpush3.msra.mxu0 %v1285_v30  ;;  %981 = vmatpush3.msra.mxu1 %v1168_v27 }
  0x40   :  { %955 = vmatprep.subr.mxu0 %v1303_v40  ;;  %982 = vmatprep.subr.mxu1 %v1187_v34 }
  0x41   :  { %956 = vmatpush3.msra.mxu0 %v1303_v40  ;;  %983 = vmatpush3.msra.mxu1 %v1187_v34 }
  0x42   :  { %957 = vmatprep.subr.mxu0 %v1315_v51  ;;  %984 = vmatprep.subr.mxu1 %v1211_v45 }
  0x43   :  { %958 = vmatpush3.msra.mxu0 %v1315_v51  ;;  %985 = vmatpush3.msra.mxu1 %v1211_v45 }
  0x44   :  { %959 = vmatprep.subr.mxu0 %v1325_v59  ;;  %986 = vmatprep.subr.mxu1 %v1217_v47 }
  0x45   :  { %960 = vmatpush3.msra.mxu0 %v1325_v59  ;;  %961 = vmatprep.mubr.f32.mxu0 %v1282_v25 }
  0x46   :  { %987 = vmatpush3.msra.mxu1 %v1217_v47  ;;  %962 = vmatmul.mubr.f32.vlgmr.msra.gmra.mxu0 %v1291_v32 }
  0x47   :  { %988 = vmatprep.subr.mxu1 %v1241_v57  ;;  %999 = vmatprep.subr.mxu0 %v1151_v21 }
  0x48   :  { %989 = vmatpush3.msra.mxu1 %v1241_v57  ;;  %1000 = vmatpush3.msra.mxu0 %v1151_v21 }
  0x49   :  { %990 = vmatprep.subr.mxu1 %v1270_v8  ;;  %1001 = vmatprep.subr.mxu0 %v1154_v22 }
  0x4a   :  { %991 = vmatpush3.msra.mxu1 %v1270_v8  ;;  %1002 = vmatpush3.msra.mxu0 %v1154_v22 }
  0x4b   :  { %992 = vmatprep.subr.mxu1 %v1288_v31  ;;  %1003 = vmatprep.subr.mxu0 %v1157_v23 }
  0x4c   :  { %993 = vmatpush3.msra.mxu1 %v1288_v31  ;;  %1004 = vmatpush3.msra.mxu0 %v1157_v23 }
  0x4d   :  { %994 = vmatprep.subr.mxu1 %v1300_v38  ;;  %1005 = vmatprep.subr.mxu0 %v1166_v26 }
  0x4e   :  { %995 = vmatpush3.msra.mxu1 %v1300_v38  ;;  %996 = vmatprep.mubr.f32.mxu1 %v1516_v14 }
  0x4f   :  { %1006 = vmatpush3.msra.mxu0 %v1166_v26  ;;  %997 = vmatmul.mubr.f32.vlgmr.msra.gmra.mxu1 %v1517_v15 }
  0x50   :  { %1007 = vmatprep.subr.mxu0 %v1171_v28  ;;  %1034 = vmatprep.subr.mxu1 %v1100_v3 }
  0x51   :  { %1008 = vmatpush3.msra.mxu0 %v1171_v28  ;;  %1035 = vmatpush3.msra.mxu1 %v1100_v3  ;;  %v1070_v3 = vmov 0.0  }
  0x52   :  { %1009 = vmatprep.subr.mxu0 %v1196_v39  ;;  %1036 = vmatprep.subr.mxu1 %v1102_v4  ;;  %20 = vst.msk [vmem:[#allocation2 + $0x8] sm:$0xff] %vm18_vm0, %v1070_v3  ;;  %19 = vst.msk [vmem:[#allocation2] sm:$0xff] %vm18_vm0, %v1070_v3 }
  0x53   :  { %1010 = vmatpush3.msra.mxu0 %v1196_v39  ;;  %1037 = vmatpush3.msra.mxu1 %v1102_v4 }
  0x54   :  { %1011 = vmatprep.subr.mxu0 %v1205_v42  ;;  %1038 = vmatprep.subr.mxu1 %v1104_v5 }
  0x55   :  { %1012 = vmatpush3.msra.mxu0 %v1205_v42  ;;  %1039 = vmatpush3.msra.mxu1 %v1104_v5 }
  0x56   :  { %1013 = vmatprep.subr.mxu0 %v1229_v52  ;;  %1040 = vmatprep.subr.mxu1 %v1115_v9 }
  0x57   :  { %1014 = vmatpush3.msra.mxu0 %v1229_v52  ;;  %1041 = vmatpush3.msra.mxu1 %v1115_v9 }
  0x58   :  { %1015 = vmatprep.subr.mxu0 %v1244_v58  ;;  %1042 = vmatprep.subr.mxu1 %v1117_v10 }
  0x59   :  { %1016 = vmatpush3.msra.mxu0 %v1244_v58  ;;  %1043 = vmatpush3.msra.mxu1 %v1117_v10  ;;  %v22_v33 = vld [vmem:[#allocation2 + $0x8] sm:$0xff]  ;;  %v21_v43 = vld [vmem:[#allocation2] sm:$0xff] }
  0x5a   :  { %1017 = vmatprep.subr.mxu0 %v1261_v1  ;;  %1044 = vmatprep.subr.mxu1 %v1119_v11 }
  0x5b   :  { %1018 = vmatpush3.msra.mxu0 %v1261_v1  ;;  %1045 = vmatpush3.msra.mxu1 %v1119_v11 }
  0x5c   :  { %1019 = vmatprep.subr.mxu0 %v1276_v13  ;;  %1046 = vmatprep.subr.mxu1 %v1134_v16 }
  0x5d   :  { %1020 = vmatpush3.msra.mxu0 %v1276_v13  ;;  %1047 = vmatpush3.msra.mxu1 %v1134_v16 }
  0x5e   :  { %1021 = vmatprep.subr.mxu0 %v1297_v37  ;;  %1048 = vmatprep.subr.mxu1 %v1159_v24 }
  0x5f   :  { %1022 = vmatpush3.msra.mxu0 %v1297_v37  ;;  %1049 = vmatpush3.msra.mxu1 %v1159_v24 }
  0x60   :  { %1023 = vmatprep.subr.mxu0 %v1310_v49  ;;  %1050 = vmatprep.subr.mxu1 %v1168_v27 }
  0x61   :  { %1024 = vmatpush3.msra.mxu0 %v1310_v49  ;;  %1051 = vmatpush3.msra.mxu1 %v1168_v27 }
  0x62   :  { %1025 = vmatprep.subr.mxu0 %v1322_v56  ;;  %1052 = vmatprep.subr.mxu1 %v1187_v34 }
  0x63   :  { %1026 = vmatpush3.msra.mxu0 %v1322_v56  ;;  %1053 = vmatpush3.msra.mxu1 %v1187_v34 }
  0x64   :  { %1027 = vmatprep.subr.mxu0 %v1338_v12  ;;  %1054 = vmatprep.subr.mxu1 %v1211_v45 }
  0x65   :  { %1028 = vmatpush3.msra.mxu0 %v1338_v12  ;;  %1055 = vmatpush3.msra.mxu1 %v1211_v45 }
  0x66   :  { %1029 = vmatprep.subr.mxu0 %v1345_v36  ;;  %1056 = vmatprep.subr.mxu1 %v1217_v47 }
  0x67   :  { %1030 = vmatpush3.msra.mxu0 %v1345_v36  ;;  %1031 = vmatprep.mubr.f32.mxu0 %v1252_v61 }
  0x68   :  { %1057 = vmatpush3.msra.mxu1 %v1217_v47  ;;  %1032 = vmatmul.mubr.f32.vlgmr.msra.gmra.mxu0 %v1255_v62 }
  0x69   :  { %1058 = vmatprep.subr.mxu1 %v1241_v57  ;;  %1066 = vmatprep.mubr.f32.mxu1 %v1252_v61 }
  0x6a   :  { %1059 = vmatpush3.msra.mxu1 %v1241_v57 }
  0x6b   :  { %1060 = vmatprep.subr.mxu1 %v1270_v8 }
  0x6c   :  { %1061 = vmatpush3.msra.mxu1 %v1270_v8 }
  0x6d   :  { %1062 = vmatprep.subr.mxu1 %v1288_v31 }
  0x6e   :  { %1063 = vmatpush3.msra.mxu1 %v1288_v31 }
  0x6f   :  { %1064 = vmatprep.subr.mxu1 %v1300_v38 }
  0x70   :  { %1065 = vmatpush3.msra.mxu1 %v1300_v38 }
  0x71   :  { %1067 = vmatmul.mubr.f32.vlgmr.msra.gmra.mxu1 %v1255_v62 }
  0xe5   :  { %v893_v4 = vpop.f32.mrf.mxu0 }
  0xe7   :  { %v128_v5 = vpop.f32.mrf.mxu0 }
  0xed   :  { %v928_v9 = vpop.f32.mrf.mxu1 }
  0xee   :  { %v296_v19 = vadd.f32 %v928_v9, %v893_v4 }
  0xef   :  { %v289_v11 = vpop.f32.mrf.mxu1 }
  0xf0   :  { %v290_v21 = vadd.f32 %v289_v11, %v128_v5 }
 0x106   :  { %v963_v10 = vpop.f32.mrf.mxu0 }
 0x107   :  { %v407_v22 = vadd.f32 %v963_v10, %v296_v19 }
 0x108   :  { %v399_v16 = vpop.f32.mrf.mxu0 }
 0x109   :  { %v400_v24 = vadd.f32 %v399_v16, %v290_v21 }
 0x10f   :  { %v998_v17 = vpop.f32.mrf.mxu1 }
 0x110   :  { %v504_v26 = vadd.f32 %v998_v17, %v407_v22 }
 0x111   :  { %v495_v23 = vpop.f32.mrf.mxu1 }
 0x112   :  { %v496_v28 = vadd.f32 %v495_v23, %v400_v24 }
 0x128   :  { %v1033_v20 = vpop.f32.mrf.mxu0 }
 0x129   :  { %v629_v29 = vadd.f32 %v1033_v20, %v504_v26 }
 0x12a   :  { %v622_v27 = vpop.f32.mrf.mxu0 }
 0x12b   :  { %v623_v39 = vadd.f32 %v622_v27, %v496_v28 }
 0x131   :  { %v1068_v34 = vpop.f32.mrf.mxu1 }
 0x132   :  { %v722_v42 = vadd.f32 %v1068_v34, %v629_v29 }
 0x133   :  { %v715_v45 = vpop.f32.mrf.mxu1 }
 0x134   :  { %v726_v46 = vadd.f32 %v722_v42, %v22_v33  ;;  %v716_v47 = vadd.f32 %v715_v45, %v623_v39 }
 0x136   :  { %729 = vst.msk [vmem:[#allocation2 + $0x8] sm:$0xff] %vm18_vm0, %v726_v46  ;;  %v725_v52 = vadd.f32 %v716_v47, %v21_v43 }
 0x138   :  { %728 = vst.msk [vmem:[#allocation2] sm:$0xff] %vm18_vm0, %v725_v52 }
 0x13d   :  { %v734_v57 = vld [vmem:[#allocation2 + $0x8] sm:$0xff] }
 0x13e   :  { %v743_v58 = vadd.f32 %v750_v53, %v734_v57 }
 0x13f   :  { %v733_v60 = vld [vmem:[#allocation2] sm:$0xff] }
 0x140   :  { %745 = vst.msk [vmem:[%s1513_s3 + $0x8] sm:$0xff] %vm18_vm0, %v743_v58  ;;  %v742_v61 = vadd.f32 %v750_v53, %v733_v60 }
 0x142   :  { %744 = vst.msk [vmem:[%s1513_s3] sm:$0xff] %vm18_vm0, %v742_v61 }

// kernel: _lambda_.33
= control target key start
LH: loop header
LB: loop body
LE: loop exit
PB: predicated region body
PF: predicated region fallthrough
CT: control target
= control target key end

     0   :  { %s420_s0 = inlined_call_operand.vmem [shape: s32[8], index: 0, kind: input, shape index: {}]   ;;  %s421_s1 = inlined_call_operand.vmem [shape: f32[16,1,32], index: 1, kind: input, shape index: {}]   ;;  %s422_s2 = inlined_call_operand.hbm [shape: f32[8,1,32], index: 2, kind: output, shape index: {}]  }
   0x1   :  { %s7_s11 = sshll.u32 %s420_s0, 4  ;;  %s8_s11 = int_to_ptr.vmem [resolvable:$true] %s7_s11 }
   0x2   :  { %s237_s12 = scalar_lea.vmem %s8_s11, 16  ;;  %p242_p1 = scmp.lt.s32.totalorder %s8_s11, %s8_s11 }
   0x3   :  { %p238_p0 = scmp.ne.s32.totalorder %s8_s11, %s237_s12  ;;  %p243_p2 = scmp.lt.s32.totalorder %s237_s12, %s237_s12 }
   0x5   :  { %p244_p3 = por %p243_p2, %p242_p1 }
   0x7   :  { %p245_p4 = pnand %p244_p3, %p238_p0 }
   0x9   :  { %248 = shalt.err (!%p245_p4)  }
   0xa   :  { %s313_s13 = smov [#allocation3]  }
   0xb   :  { %10 = dma.vmem_to_smem %s8_s11, 16, %s313_s13, [#allocation2] }
   0xc   :  { %291 = dma.done.wait [#allocation2], 16 }
   0xd   :  { %292 = vsyncadd [#allocation2], 4294967280 }
   0xe   :  { %12 = sfence }
   0xf   :  { %13 = vsyncpa [#allocation5], 0 }
  0x10   :  { %15 = vsyncpa [#allocation5 + $0x1], 0  ;;  %s333_s14 = smov 0   ;;  %s335_s15 = smov 0  }
  0x11   :  { %s337_s0 = smov 0   ;;  %s339_s16 = smov 0  }
  0x12 LB: > { %s189_s17 = sadd.s32 4294967295, %s311_s16   ;;  %s190_s18 = sadd.s32 4294967294, %s311_s16   ;;  %s311_s16 = sphi %s339_s16, %s428_s16   ;;  %s307_s0 = sphi %s337_s0, %s427_s0   ;;  %s303_s15 = sphi %s335_s15, %s426_s15   ;;  %s299_s14 = sphi %s333_s14, %s425_s14  }
  0x13   : > { %s356_s19 = sadd.s32 1, %s311_s16   ;;  %s56_s20 = sadd.s32 1, %s307_s0 }
  0x14   : > { %s53_s21 = ssub.s32 %s311_s16, %s356_s19  ;;  %p66_p5 = scmp.ne.s32.totalorder %s307_s0, %s303_s15 }
  0x15   : > { %p54_p6 = scmp.eq.s32.totalorder %s53_s21, 0  ;;  %p67_p7 = scmp.eq.s32.totalorder %s189_s17, 7 }
  0x16   : > { %p72_p8 = scmp.ne.s32.totalorder %s303_s15, %s299_s14  ;;  %p73_p9 = scmp.eq.s32.totalorder %s190_s18, 7 }
  0x17   : > { %s366_s22 = scalar_select %p54_p6, %s307_s0, %s56_s20  }
  0x18   : > { %p368_p10 = por %p67_p7, %p66_p5  ;;  %p372_p11 = por %p73_p9, %p72_p8 }
  0x19   : > { %p193_p12 = scmp.ge.s32.totalorder %s311_s16, 1  ;;  %p99_p13 = scmp.lt.s32.totalorder %s311_s16, 9 }
  0x1b   : > { %p100_p0 = pnand %p193_p12, %p99_p13 }
  0x1c   : > { %s115_s25 = sand.u32 (!%p100_p0), 1, %s303_s15   ;;  %s117_s26 = sld [smem:[#allocation3 + %s189_s17]] (!%p100_p0) }
  0x1d   : > { %103 = sbr.rel (%p100_p0) target bundleno = 54 (0x36), region = 24  ;;  %s116_s27 = scalar_lea.vmem (!%p100_p0), [#allocation4], %s115_s25 }
  0x1e   : > { %s138_s28 = sshll.u32 (!%p100_p0), %s116_s27, 4  ;;  %s194_s29 = sshll.u32 (!%p100_p0), %s189_s17, 4  ;;  %s379_s28 = int_to_ptr.vmem [resolvable:$true] %s138_s28 }
  0x1f   : > { %s136_s7 = scalar_lea.hbm (!%p100_p0), %s422_s2, %s194_s29  ;;  %s126_s8 = scalar_lea.sflag (!%p100_p0), [#allocation5], %s115_s25 }
  0x20   : > { %s249_s9 = scalar_lea.vmem (!%p100_p0), %s379_s28, 16  ;;  %s314_s10 = smov (!%p100_p0), [#allocation4]  }
  0x21   : > { %p250_p2 = scmp.ne.s32.totalorder (!%p100_p0), %s379_s28, %s249_s9  ;;  %s253_s11 = sshll.u32 (!%p100_p0), %s314_s10, 4  ;;  %s254_s11 = int_to_ptr.vmem [resolvable:$false] %s253_s11 }
  0x22   : > { %p118_p1 = scmp.lt.s32.totalorder %s117_s26, 15  ;;  %vm123_vm0 = vcmask 253952   ;;  %s255_s12 = scalar_lea.vmem %s254_s11, 32 }
  0x23   : > { %p251_p3 = pnand %p250_p2, %p368_p10  ;;  %p256_p5 = scmp.lt.s32.totalorder %s379_s28, %s254_s11 }
  0x24   : > { %s430_s26 = smov (!%p118_p1, %s117_s26), 15  ;;  %p257_p6 = scmp.lt.s32.totalorder %s255_s12, %s249_s9 }
  0x25   : > { %s120_s4 = scalar_lea.vmem %s421_s1, %s430_s26  ;;  %p252_p4 = pneg %p251_p3 }
  0x26   : > { %v122_v0 = vld [vmem:[%s120_s4] sm:$0x1]  ;;  %p258_p7 = por %p257_p6, %p256_p5 }
  0x27   : > { %124 = vst.msk [vmem:[%s116_s27] sm:$0x1] %vm123_vm0, %v122_v0 }
  0x28   : > { %p259_p8 = pnand %p258_p7, %p252_p4 }
  0x2a   : > { %262 = shalt.err (!%p259_p8)
}
  0x2b   : > { %s263_s13 = scalar_lea.hbm %s136_s7, 16  ;;  %s267_s20 = scalar_lea.hbm %s422_s2, 128 }
  0x2c   : > { %p264_p9 = scmp.ne.s32.totalorder %s136_s7, %s263_s13  ;;  %p268_p0 = scmp.lt.s32.totalorder %s136_s7, %s422_s2 }
  0x2d   : > { %p269_p1 = scmp.lt.s32.totalorder %s267_s20, %s263_s13 }
  0x2e   : > { %p265_p12 = pnand %p264_p9, %p368_p10 }
  0x2f   : > { %p270_p2 = por %p269_p1, %p268_p0 }
  0x30   : > { %p266_p13 = pneg %p265_p12 }
  0x32   : > { %p271_p3 = pnand %p270_p2, %p266_p13 }
  0x34   : > { %274 = shalt.err (!%p271_p3)
}
  0x35   : > { %197 = dma.vmem_to_hbm [thread:$0]  (%p368_p10), %s379_s28, 16, %s136_s7, %s126_s8  }
  0x36 PF: > { %p203_p4 = scmp.ge.s32.totalorder %s311_s16, 2  ;;  %s150_s26 = sand.u32 1, %s299_s14  }
  0x37   : > { %s151_s27 = scalar_lea.sflag [#allocation5], %s150_s26 }
  0x38   : > { %p200_p5 = pnand %p203_p4, %p372_p11 }
  0x3a   : > { %p201_p6 = pneg %p200_p5 }
  0x3c   : > { %294 = dma.done.wait (%p201_p6), %s151_s27, 16  }
  0x3d   : > { %296 = vsyncadd (%p201_p6), %s151_s27, 4294967280  ;;  %p18_p7 = scmp.ge.s32.totalorder %s356_s19, 10   ;;  %s425_s14 = smov %s303_s15 }
  0x3e   : > { %s426_s15 = smov %s307_s0  ;;  %s427_s0 = smov %s366_s22 }
  0x3f   : > { %s428_s16 = smov %s356_s19  ;;  %20 = sbr.rel (!%p18_p7) target bundleno = 18 (0x12), region = 59 }
  0x44   :  { %155 = vsyncpa [#allocation5], 1 }
  0x45   :  { %157 = vsyncpa [#allocation5 + $0x1], 1 }

</bundles_post_ra>
